<compile_context>
chip_gen: v5e
topology: v5e:2x2
jax: 0.10.0
libtpu: 0.0.40
codegen_flags: <defaults>
</compile_context>

<pallas_src>
import jax
import jax.numpy as jnp
import numpy as np
from jax import lax
from jax.experimental import pallas as pl
from jax.experimental.pallas import tpu as pltpu

_EPS = 1e-6


# ----------------------------- Pallas kernel ------------------------------- #

def _attn_block_kernel(x_ref, gmat_ref, gamma_ref, beta_ref,
                       wq_ref, bq_ref, wk_ref, bk_ref,
                       wv_ref, bv_ref, wp_ref, bp_ref, o_ref):
    """Fused GroupNorm + QKV + spatial attention + proj + residual.

    x_ref   : (Bt, S, C) f32   Bt batch elements, spatial flattened, C on lanes
    gmat_ref: (C, C) f32       group-averaging matrix, 1/Cg if same group
    gamma/beta, b*      : (1, C) f32
    wq/wk/wv/wp         : (C, C) bf16  1x1-conv weights laid out (Cin, Cout);
                          wq/bq already carry the 1/sqrt(C) attention scale.
    o_ref   : (Bt, S, C)
    """
    bt, s, c = x_ref.shape
    x = x_ref[...].astype(jnp.float32)                      # (Bt, S, C)

    # ---- GroupNorm(32, eps=1e-6): per-sample group stats -------------------
    s1 = jnp.sum(x, axis=1)                                  # (Bt, C)
    s2 = jnp.sum(x * x, axis=1)                              # (Bt, C)
    stats = jnp.concatenate([s1, s2], axis=0)                # (2*Bt, C)
    g = jnp.dot(stats, gmat_ref[...],
                preferred_element_type=jnp.float32,
                precision=jax.lax.Precision.HIGHEST) * (1.0 / float(s))
    mean, ex2 = g[:bt], g[bt:]                               # (Bt, C) each
    var = jnp.maximum(ex2 - mean * mean, 0.0)
    inv_std = lax.rsqrt(var + _EPS)
    scale2d = inv_std * gamma_ref[...]                       # (Bt, C)
    shift2d = beta_ref[...] - mean * scale2d                 # (Bt, C)
    h = (x * scale2d[:, None, :] + shift2d[:, None, :]).astype(jnp.bfloat16)
    # (x is dead here; residual re-reads x_ref at the end.)

    # ---- 1x1-conv projections on the flattened (Bt*S, C) slab --------------
    h2 = h.reshape(bt * s, c)                                # bf16
    q = jnp.dot(h2, wq_ref[...], preferred_element_type=jnp.float32) + bq_ref[...]
    k = jnp.dot(h2, wk_ref[...], preferred_element_type=jnp.float32) + bk_ref[...]
    v = jnp.dot(h2, wv_ref[...], preferred_element_type=jnp.float32) + bv_ref[...]
    qb = q.astype(jnp.bfloat16).reshape(bt, s, c)
    kb = k.astype(jnp.bfloat16).reshape(bt, s, c)
    vb = v.astype(jnp.bfloat16).reshape(bt, s, c)

    # ---- attention over spatial positions (scale already folded into Wq) ---
    logits = jnp.einsum('bqd,bkd->bqk', qb, kb,
                        preferred_element_type=jnp.float32)  # (Bt, S, S) f32
    logits = logits - jnp.max(logits, axis=-1, keepdims=True)
    p = jnp.exp(logits)                                      # f32 (v5e: no bf16 EUP)
    inv_sum = pl.reciprocal(jnp.sum(p, axis=-1, keepdims=True), approx=True)
    ctx = jnp.einsum('bqk,bkd->bqd', p.astype(jnp.bfloat16), vb,
                     preferred_element_type=jnp.float32)     # (Bt, S, C)
    ctx = ctx * inv_sum                                      # deferred softmax norm

    # ---- output projection + residual (re-read x_ref: short live range) ----
    proj = jnp.dot(ctx.reshape(bt * s, c).astype(jnp.bfloat16), wp_ref[...],
                   preferred_element_type=jnp.float32) + bp_ref[...]
    o_ref[...] = (x_ref[...].astype(jnp.float32)
                  + proj.reshape(bt, s, c)).astype(o_ref.dtype)


# ------------------------------ JAX wrapper --------------------------------- #

def _pick_block_batch(n, s):
    """Largest divisor of n with block_batch*s >= ~256 MXU rows, while keeping
    at least two grid steps when n >= 2 (so both v7x TensorCores stay busy)."""
    target = max(1, 256 // max(s, 1))
    divisors = [d for d in range(1, n + 1) if n % d == 0]
    best = max([d for d in divisors if d <= target], default=1)
    while best > 1 and n // best < 2:
        smaller = [d for d in divisors if d < best]
        best = smaller[-1] if smaller else 1
    return best


def attn_block_forward(x_nchw, params, *, num_groups=32, block_batch=None):
    n, c, h, w = x_nchw.shape
    assert c % num_groups == 0, "GroupNorm(32) requires C % 32 == 0"
    s = h * w
    cg = c // num_groups
    bt = block_batch if block_batch is not None else _pick_block_batch(n, s)
    assert n % bt == 0

    # NCHW -> (N, S, C): channels on TPU lanes, spatial flattened row-major
    # (same (h, w) flattening order as the PyTorch reshape).
    x_flat = jnp.transpose(x_nchw, (0, 2, 3, 1)).reshape(n, s, c)

    # Constant group-averaging matrix: P[c, c'] = 1/Cg if same group else 0.
    gid = np.arange(c) // cg
    gmat = jnp.asarray((gid[:, None] == gid[None, :]).astype(np.float32) / cg)

    attn_scale = float(c) ** (-0.5)

    def mat(key, scl=1.0):  # Conv2d 1x1 weight (Cout, Cin, 1, 1) -> (Cin, Cout) bf16
        return (params[key].reshape(c, c).T * scl).astype(jnp.bfloat16)

    def vec(key, scl=1.0):
        return (params[key].reshape(1, c) * scl).astype(jnp.float32)

    gamma = params["norm_weight"].reshape(1, c).astype(jnp.float32)
    beta = params["norm_bias"].reshape(1, c).astype(jnp.float32)

    # VMEM budget: 2x double-buffered x/out slabs + (double-buffered) weights +
    # the in-kernel intermediates, with 1.5x headroom.
    bsc = bt * s * c
    x_io = 4 * bsc * 4
    wts = 2 * (4 * c * c * 2 + c * c * 4 + 6 * c * 4)
    interm = 4 * bsc * 2 + 3 * bsc * 4 + 2 * bt * s * s * 4 + 2 * bsc * 4
    vmem_limit = max(32 << 20, min(64 << 20, int(1.5 * (x_io + wts + interm)) + (2 << 20)))

    const2 = lambda i: (0, 0)
    out_flat = pl.pallas_call(
        _attn_block_kernel,
        out_shape=jax.ShapeDtypeStruct((n, s, c), x_nchw.dtype),
        grid=(n // bt,),
        in_specs=[
            pl.BlockSpec((bt, s, c), lambda i: (i, 0, 0)),   # x block
            pl.BlockSpec((c, c), const2),                    # group matrix
            pl.BlockSpec((1, c), const2),                    # gamma
            pl.BlockSpec((1, c), const2),                    # beta
            pl.BlockSpec((c, c), const2), pl.BlockSpec((1, c), const2),  # q
            pl.BlockSpec((c, c), const2), pl.BlockSpec((1, c), const2),  # k
            pl.BlockSpec((c, c), const2), pl.BlockSpec((1, c), const2),  # v
            pl.BlockSpec((c, c), const2), pl.BlockSpec((1, c), const2),  # proj
        ],
        out_specs=pl.BlockSpec((bt, s, c), lambda i: (i, 0, 0)),
        compiler_params=pltpu.CompilerParams(
            dimension_semantics=("parallel",),
            vmem_limit_bytes=vmem_limit),
    )(x_flat, gmat, gamma, beta,
      mat("q_weight", attn_scale), vec("q_bias", attn_scale),   # scale folded into Wq/bq
      mat("k_weight"), vec("k_bias"),
      mat("v_weight"), vec("v_bias"),
      mat("proj_weight"), vec("proj_bias"))

    out = out_flat.reshape(n, h, w, c)
    return jnp.transpose(out, (0, 3, 1, 2))                  # NHWC -> NCHW


# --------------------- independent pure-JAX reference ----------------------- #

def reference_forward(x, params, num_groups=32):
    n, c, h, w = x.shape
    xg = x.reshape(n, num_groups, c // num_groups, h, w)
    mean = jnp.mean(xg, axis=(2, 3, 4), keepdims=True)
    var = jnp.var(xg, axis=(2, 3, 4), keepdims=True)
    hn = ((xg - mean) / jnp.sqrt(var + _EPS)).reshape(n, c, h, w)
    hn = (hn * params["norm_weight"][None, :, None, None]
          + params["norm_bias"][None, :, None, None])

    def conv1x1(t, wk, bk):
        wmat = params[wk].reshape(c, c)
        return (jnp.einsum("nchw,oc->nohw", t, wmat)
                + params[bk][None, :, None, None])

    q = conv1x1(hn, "q_weight", "q_bias").reshape(n, c, h * w)
    k = conv1x1(hn, "k_weight", "k_bias").reshape(n, c, h * w)
    v = conv1x1(hn, "v_weight", "v_bias").reshape(n, c, h * w)
    att = jnp.einsum("nci,ncj->nij", q, k) * (float(c) ** -0.5)
    att = jax.nn.softmax(att, axis=2)
    o = jnp.einsum("ncj,nij->nci", v, att).reshape(n, c, h, w)
    o = conv1x1(o, "proj_weight", "proj_bias")
    return x + o


# --------------------------------- main -------------------------------------- #

if __name__ == "__main__":
    key = jax.random.PRNGKey(0)
    ks = jax.random.split(key, 11)

    # GroupNorm(num_groups=32) requires C % 32 == 0; C=128 keeps every load,
    # matmul and store lane-dense (128 lanes).
    N, C, H, W = 2, 128, 8, 8
    wscale = 0.05

    x = jax.random.normal(ks[0], (N, C, H, W), dtype=jnp.float32)
    params = {
        "norm_weight": 1.0 + 0.1 * jax.random.normal(ks[1], (C,), jnp.float32),
        "norm_bias": 0.1 * jax.random.normal(ks[2], (C,), jnp.float32),
        "q_weight": wscale * jax.random.normal(ks[3], (C, C, 1, 1), jnp.float32),
        "q_bias": wscale * jax.random.normal(ks[4], (C,), jnp.float32),
        "k_weight": wscale * jax.random.normal(ks[5], (C, C, 1, 1), jnp.float32),
        "k_bias": wscale * jax.random.normal(ks[6], (C,), jnp.float32),
        "v_weight": wscale * jax.random.normal(ks[7], (C, C, 1, 1), jnp.float32),
        "v_bias": wscale * jax.random.normal(ks[8], (C,), jnp.float32),
        "proj_weight": wscale * jax.random.normal(ks[9], (C, C, 1, 1), jnp.float32),
        "proj_bias": wscale * jax.random.normal(ks[10], (C,), jnp.float32),
    }

    out = jax.block_until_ready(attn_block_forward(x, params))
    ref = jax.block_until_ready(reference_forward(x, params))

    assert out.shape == (N, C, H, W), out.shape
    # Tolerance covers bf16 MXU operands in the kernel (f32 accumulation) vs.
    # the XLA reference's default (also bf16-multiply) precision; observed
    # differences are well below this bound.
    np.testing.assert_allclose(np.asarray(out), np.asarray(ref),
                               atol=2e-2, rtol=2e-2)
    print("KERNEL_OK")
</pallas_src>

<mosaic_0001>
module attributes {stable_mosaic.version = 11 : i64} {
  func.func @_attn_block_kernel(%arg0: i32, %arg1: memref<1x64x128xf32, #tpu.memory_space<vmem>>, %arg2: memref<128x128xf32, #tpu.memory_space<vmem>>, %arg3: memref<1x128xf32, #tpu.memory_space<vmem>>, %arg4: memref<1x128xf32, #tpu.memory_space<vmem>>, %arg5: memref<128x128xbf16, #tpu.memory_space<vmem>>, %arg6: memref<1x128xf32, #tpu.memory_space<vmem>>, %arg7: memref<128x128xbf16, #tpu.memory_space<vmem>>, %arg8: memref<1x128xf32, #tpu.memory_space<vmem>>, %arg9: memref<128x128xbf16, #tpu.memory_space<vmem>>, %arg10: memref<1x128xf32, #tpu.memory_space<vmem>>, %arg11: memref<128x128xbf16, #tpu.memory_space<vmem>>, %arg12: memref<1x128xf32, #tpu.memory_space<vmem>>, %arg13: memref<1x64x128xf32, #tpu.memory_space<vmem>>) attributes {dimension_semantics = [#tpu.dimension_semantics<parallel>], iteration_bounds = array<i64: 2>, scalar_prefetch = 0 : i64, scratch_operands = 0 : i64, tpu.core_type = #tpu.core_type<tc>, window_params = [{transform_indices = @transform_0, window_bounds = array<i64: 1, 64, 128>}, {pipeline_mode = #tpu.pipeline_mode<synchronous>, transform_indices = @transform_1, window_bounds = array<i64: 128, 128>}, {pipeline_mode = #tpu.pipeline_mode<synchronous>, transform_indices = @transform_2, window_bounds = array<i64: 1, 128>}, {pipeline_mode = #tpu.pipeline_mode<synchronous>, transform_indices = @transform_3, window_bounds = array<i64: 1, 128>}, {pipeline_mode = #tpu.pipeline_mode<synchronous>, transform_indices = @transform_4, window_bounds = array<i64: 128, 128>}, {pipeline_mode = #tpu.pipeline_mode<synchronous>, transform_indices = @transform_5, window_bounds = array<i64: 1, 128>}, {pipeline_mode = #tpu.pipeline_mode<synchronous>, transform_indices = @transform_6, window_bounds = array<i64: 128, 128>}, {pipeline_mode = #tpu.pipeline_mode<synchronous>, transform_indices = @transform_7, window_bounds = array<i64: 1, 128>}, {pipeline_mode = #tpu.pipeline_mode<synchronous>, transform_indices = @transform_8, window_bounds = array<i64: 128, 128>}, {pipeline_mode = #tpu.pipeline_mode<synchronous>, transform_indices = @transform_9, window_bounds = array<i64: 1, 128>}, {pipeline_mode = #tpu.pipeline_mode<synchronous>, transform_indices = @transform_10, window_bounds = array<i64: 128, 128>}, {pipeline_mode = #tpu.pipeline_mode<synchronous>, transform_indices = @transform_11, window_bounds = array<i64: 1, 128>}, {transform_indices = @transform_12, window_bounds = array<i64: 1, 64, 128>}]} {
    %c0 = arith.constant 0 : index
    %c0_0 = arith.constant 0 : index
    %c0_1 = arith.constant 0 : index
    %0 = vector.load %arg1[%c0, %c0_0, %c0_1] : memref<1x64x128xf32, #tpu.memory_space<vmem>>, vector<1x64x128xf32>
    %cst = arith.constant dense<0.000000e+00> : vector<1x128xf32>
    %1 = vector.multi_reduction <add>, %0, %cst [1] : vector<1x64x128xf32> to vector<1x128xf32>
    %2 = arith.mulf %0, %0 : vector<1x64x128xf32>
    %cst_2 = arith.constant dense<0.000000e+00> : vector<1x128xf32>
    %3 = vector.multi_reduction <add>, %2, %cst_2 [1] : vector<1x64x128xf32> to vector<1x128xf32>
    %4 = tpu.concatenate %1, %3 in 0 : vector<1x128xf32>, vector<1x128xf32> -> vector<2x128xf32>
    %c0_3 = arith.constant 0 : index
    %c0_4 = arith.constant 0 : index
    %5 = vector.load %arg2[%c0_3, %c0_4] : memref<128x128xf32, #tpu.memory_space<vmem>>, vector<128x128xf32>
    %cst_5 = arith.constant dense<0.000000e+00> : vector<2x128xf32>
    %6 = tpu.matmul %4, %5, %cst_5 {dimension_numbers = #tpu.dot_dimension_numbers<[1], [0], [0], [1], [0, 0, 1, 1], [], []>, precision = #tpu.contract_precision<fp32>} : vector<2x128xf32>, vector<128x128xf32>, vector<2x128xf32> -> vector<2x128xf32>
    %cst_6 = arith.constant 1.562500e-02 : f32
    %7 = vector.broadcast %cst_6 : f32 to vector<2x128xf32>
    %8 = arith.mulf %6, %7 : vector<2x128xf32>
    %9 = vector.extract_strided_slice %8 {offsets = [0, 0], sizes = [1, 128], strides = [1, 1]} : vector<2x128xf32> to vector<1x128xf32>
    %10 = vector.extract_strided_slice %8 {offsets = [1, 0], sizes = [1, 128], strides = [1, 1]} : vector<2x128xf32> to vector<1x128xf32>
    %11 = arith.mulf %9, %9 : vector<1x128xf32>
    %12 = arith.subf %10, %11 : vector<1x128xf32>
    %cst_7 = arith.constant 0.000000e+00 : f32
    %13 = vector.broadcast %cst_7 : f32 to vector<1x128xf32>
    %14 = arith.maximumf %12, %13 : vector<1x128xf32>
    %cst_8 = arith.constant 9.99999997E-7 : f32
    %15 = vector.broadcast %cst_8 : f32 to vector<1x128xf32>
    %16 = arith.addf %14, %15 : vector<1x128xf32>
    %17 = math.rsqrt %16 : vector<1x128xf32>
    %c0_9 = arith.constant 0 : index
    %c0_10 = arith.constant 0 : index
    %18 = vector.load %arg3[%c0_9, %c0_10] : memref<1x128xf32, #tpu.memory_space<vmem>>, vector<1x128xf32>
    %19 = arith.mulf %17, %18 : vector<1x128xf32>
    %c0_11 = arith.constant 0 : index
    %c0_12 = arith.constant 0 : index
    %20 = vector.load %arg4[%c0_11, %c0_12] : memref<1x128xf32, #tpu.memory_space<vmem>>, vector<1x128xf32>
    %21 = arith.mulf %9, %19 : vector<1x128xf32>
    %22 = arith.subf %20, %21 : vector<1x128xf32>
    %23 = vector.shape_cast %19 : vector<1x128xf32> to vector<1x1x128xf32>
    %24 = vector.broadcast %23 : vector<1x1x128xf32> to vector<1x64x128xf32>
    %25 = arith.mulf %0, %24 : vector<1x64x128xf32>
    %26 = vector.shape_cast %22 : vector<1x128xf32> to vector<1x1x128xf32>
    %27 = vector.broadcast %26 : vector<1x1x128xf32> to vector<1x64x128xf32>
    %28 = arith.addf %25, %27 : vector<1x64x128xf32>
    %29 = arith.truncf %28 : vector<1x64x128xf32> to vector<1x64x128xbf16>
    %30 = vector.shape_cast %29 : vector<1x64x128xbf16> to vector<64x128xbf16>
    %c0_13 = arith.constant 0 : index
    %c0_14 = arith.constant 0 : index
    %31 = vector.load %arg5[%c0_13, %c0_14] : memref<128x128xbf16, #tpu.memory_space<vmem>>, vector<128x128xbf16>
    %cst_15 = arith.constant dense<0.000000e+00> : vector<64x128xf32>
    %32 = tpu.matmul %30, %31, %cst_15 {dimension_numbers = #tpu.dot_dimension_numbers<[1], [0], [0], [1], [0, 0, 1, 1], [], []>} : vector<64x128xbf16>, vector<128x128xbf16>, vector<64x128xf32> -> vector<64x128xf32>
    %c0_16 = arith.constant 0 : index
    %c0_17 = arith.constant 0 : index
    %33 = vector.load %arg6[%c0_16, %c0_17] : memref<1x128xf32, #tpu.memory_space<vmem>>, vector<1x128xf32>
    %34 = vector.broadcast %33 : vector<1x128xf32> to vector<64x128xf32>
    %35 = arith.addf %32, %34 : vector<64x128xf32>
    %c0_18 = arith.constant 0 : index
    %c0_19 = arith.constant 0 : index
    %36 = vector.load %arg7[%c0_18, %c0_19] : memref<128x128xbf16, #tpu.memory_space<vmem>>, vector<128x128xbf16>
    %cst_20 = arith.constant dense<0.000000e+00> : vector<64x128xf32>
    %37 = tpu.matmul %30, %36, %cst_20 {dimension_numbers = #tpu.dot_dimension_numbers<[1], [0], [0], [1], [0, 0, 1, 1], [], []>} : vector<64x128xbf16>, vector<128x128xbf16>, vector<64x128xf32> -> vector<64x128xf32>
    %c0_21 = arith.constant 0 : index
    %c0_22 = arith.constant 0 : index
    %38 = vector.load %arg8[%c0_21, %c0_22] : memref<1x128xf32, #tpu.memory_space<vmem>>, vector<1x128xf32>
    %39 = vector.broadcast %38 : vector<1x128xf32> to vector<64x128xf32>
    %40 = arith.addf %37, %39 : vector<64x128xf32>
    %c0_23 = arith.constant 0 : index
    %c0_24 = arith.constant 0 : index
    %41 = vector.load %arg9[%c0_23, %c0_24] : memref<128x128xbf16, #tpu.memory_space<vmem>>, vector<128x128xbf16>
    %cst_25 = arith.constant dense<0.000000e+00> : vector<64x128xf32>
    %42 = tpu.matmul %30, %41, %cst_25 {dimension_numbers = #tpu.dot_dimension_numbers<[1], [0], [0], [1], [0, 0, 1, 1], [], []>} : vector<64x128xbf16>, vector<128x128xbf16>, vector<64x128xf32> -> vector<64x128xf32>
    %c0_26 = arith.constant 0 : index
    %c0_27 = arith.constant 0 : index
    %43 = vector.load %arg10[%c0_26, %c0_27] : memref<1x128xf32, #tpu.memory_space<vmem>>, vector<1x128xf32>
    %44 = vector.broadcast %43 : vector<1x128xf32> to vector<64x128xf32>
    %45 = arith.addf %42, %44 : vector<64x128xf32>
    %46 = arith.truncf %35 : vector<64x128xf32> to vector<64x128xbf16>
    %47 = vector.shape_cast %46 : vector<64x128xbf16> to vector<1x64x128xbf16>
    %48 = arith.truncf %40 : vector<64x128xf32> to vector<64x128xbf16>
    %49 = vector.shape_cast %48 : vector<64x128xbf16> to vector<1x64x128xbf16>
    %50 = arith.truncf %45 : vector<64x128xf32> to vector<64x128xbf16>
    %51 = vector.shape_cast %50 : vector<64x128xbf16> to vector<1x64x128xbf16>
    "tpu.trace_start"() <{level = 10 : i32, message = "bqd,bkd->bqk"}> : () -> ()
    %cst_28 = arith.constant dense<0.000000e+00> : vector<1x64x64xf32>
    %52 = tpu.matmul %47, %49, %cst_28 {dimension_numbers = #tpu.dot_dimension_numbers<[2], [2], [1], [1], [0, 0, 0, 1, 1, 1], [0], [0]>} : vector<1x64x128xbf16>, vector<1x64x128xbf16>, vector<1x64x64xf32> -> vector<1x64x64xf32>
    "tpu.trace_stop"() : () -> ()
    %cst_29 = arith.constant dense<0xFF800000> : vector<1x64xf32>
    %53 = vector.multi_reduction <maximumf>, %52, %cst_29 [2] : vector<1x64x64xf32> to vector<1x64xf32>
    %54 = vector.shape_cast %53 : vector<1x64xf32> to vector<1x64x1xf32>
    %55 = vector.broadcast %54 : vector<1x64x1xf32> to vector<1x64x64xf32>
    %56 = arith.subf %52, %55 : vector<1x64x64xf32>
    %57 = math.exp %56 : vector<1x64x64xf32>
    %cst_30 = arith.constant dense<0.000000e+00> : vector<1x64xf32>
    %58 = vector.multi_reduction <add>, %57, %cst_30 [2] : vector<1x64x64xf32> to vector<1x64xf32>
    %59 = vector.shape_cast %58 : vector<1x64xf32> to vector<1x64x1xf32>
    %60 = tpu.reciprocal %59 {approx = true} : vector<1x64x1xf32> -> vector<1x64x1xf32>
    %61 = arith.truncf %57 : vector<1x64x64xf32> to vector<1x64x64xbf16>
    "tpu.trace_start"() <{level = 10 : i32, message = "bqk,bkd->bqd"}> : () -> ()
    %cst_31 = arith.constant dense<0.000000e+00> : vector<1x64x128xf32>
    %62 = tpu.matmul %61, %51, %cst_31 {dimension_numbers = #tpu.dot_dimension_numbers<[2], [1], [1], [2], [0, 0, 0, 1, 1, 2], [0], [0]>} : vector<1x64x64xbf16>, vector<1x64x128xbf16>, vector<1x64x128xf32> -> vector<1x64x128xf32>
    "tpu.trace_stop"() : () -> ()
    %63 = vector.broadcast %60 : vector<1x64x1xf32> to vector<1x64x128xf32>
    %64 = arith.mulf %62, %63 : vector<1x64x128xf32>
    %65 = vector.shape_cast %64 : vector<1x64x128xf32> to vector<64x128xf32>
    %66 = arith.truncf %65 : vector<64x128xf32> to vector<64x128xbf16>
    %c0_32 = arith.constant 0 : index
    %c0_33 = arith.constant 0 : index
    %67 = vector.load %arg11[%c0_32, %c0_33] : memref<128x128xbf16, #tpu.memory_space<vmem>>, vector<128x128xbf16>
    %cst_34 = arith.constant dense<0.000000e+00> : vector<64x128xf32>
    %68 = tpu.matmul %66, %67, %cst_34 {dimension_numbers = #tpu.dot_dimension_numbers<[1], [0], [0], [1], [0, 0, 1, 1], [], []>} : vector<64x128xbf16>, vector<128x128xbf16>, vector<64x128xf32> -> vector<64x128xf32>
    %c0_35 = arith.constant 0 : index
    %c0_36 = arith.constant 0 : index
    %69 = vector.load %arg12[%c0_35, %c0_36] : memref<1x128xf32, #tpu.memory_space<vmem>>, vector<1x128xf32>
    %70 = vector.broadcast %69 : vector<1x128xf32> to vector<64x128xf32>
    %71 = arith.addf %68, %70 : vector<64x128xf32>
    %c0_37 = arith.constant 0 : index
    %c0_38 = arith.constant 0 : index
    %c0_39 = arith.constant 0 : index
    %72 = vector.load %arg1[%c0_37, %c0_38, %c0_39] : memref<1x64x128xf32, #tpu.memory_space<vmem>>, vector<1x64x128xf32>
    %73 = vector.shape_cast %71 : vector<64x128xf32> to vector<1x64x128xf32>
    %74 = arith.addf %72, %73 : vector<1x64x128xf32>
    %c0_40 = arith.constant 0 : index
    %c0_41 = arith.constant 0 : index
    %c0_42 = arith.constant 0 : index
    %75 = vector.load %arg13[%c0_40, %c0_41, %c0_42] : memref<1x64x128xf32, #tpu.memory_space<vmem>>, vector<1x64x128xf32>
    tpu.vector_store %arg13[%c0_40, %c0_41, %c0_42], %74 {strides = array<i32>} : memref<1x64x128xf32, #tpu.memory_space<vmem>>, vector<1x64x128xf32>,
    return
  }
  func.func @transform_0(%arg0: i32) -> (i32, i32, i32) {
    %c0_i32 = arith.constant 0 : i32
    %c0_i32_0 = arith.constant 0 : i32
    %c0_i32_1 = arith.constant 0 : i32
    return %arg0, %c0_i32, %c0_i32_0 : i32, i32, i32
  }
  func.func @transform_1(%arg0: i32) -> (i32, i32) {
    %c0_i32 = arith.constant 0 : i32
    %c0_i32_0 = arith.constant 0 : i32
    %c0_i32_1 = arith.constant 0 : i32
    return %c0_i32, %c0_i32_0 : i32, i32
  }
  func.func @transform_2(%arg0: i32) -> (i32, i32) {
    %c0_i32 = arith.constant 0 : i32
    %c0_i32_0 = arith.constant 0 : i32
    %c0_i32_1 = arith.constant 0 : i32
    return %c0_i32, %c0_i32_0 : i32, i32
  }
  func.func @transform_3(%arg0: i32) -> (i32, i32) {
    %c0_i32 = arith.constant 0 : i32
    %c0_i32_0 = arith.constant 0 : i32
    %c0_i32_1 = arith.constant 0 : i32
    return %c0_i32, %c0_i32_0 : i32, i32
  }
  func.func @transform_4(%arg0: i32) -> (i32, i32) {
    %c0_i32 = arith.constant 0 : i32
    %c0_i32_0 = arith.constant 0 : i32
    %c0_i32_1 = arith.constant 0 : i32
    return %c0_i32, %c0_i32_0 : i32, i32
  }
  func.func @transform_5(%arg0: i32) -> (i32, i32) {
    %c0_i32 = arith.constant 0 : i32
    %c0_i32_0 = arith.constant 0 : i32
    %c0_i32_1 = arith.constant 0 : i32
    return %c0_i32, %c0_i32_0 : i32, i32
  }
  func.func @transform_6(%arg0: i32) -> (i32, i32) {
    %c0_i32 = arith.constant 0 : i32
    %c0_i32_0 = arith.constant 0 : i32
    %c0_i32_1 = arith.constant 0 : i32
    return %c0_i32, %c0_i32_0 : i32, i32
  }
  func.func @transform_7(%arg0: i32) -> (i32, i32) {
    %c0_i32 = arith.constant 0 : i32
    %c0_i32_0 = arith.constant 0 : i32
    %c0_i32_1 = arith.constant 0 : i32
    return %c0_i32, %c0_i32_0 : i32, i32
  }
  func.func @transform_8(%arg0: i32) -> (i32, i32) {
    %c0_i32 = arith.constant 0 : i32
    %c0_i32_0 = arith.constant 0 : i32
    %c0_i32_1 = arith.constant 0 : i32
    return %c0_i32, %c0_i32_0 : i32, i32
  }
  func.func @transform_9(%arg0: i32) -> (i32, i32) {
    %c0_i32 = arith.constant 0 : i32
    %c0_i32_0 = arith.constant 0 : i32
    %c0_i32_1 = arith.constant 0 : i32
    return %c0_i32, %c0_i32_0 : i32, i32
  }
  func.func @transform_10(%arg0: i32) -> (i32, i32) {
    %c0_i32 = arith.constant 0 : i32
    %c0_i32_0 = arith.constant 0 : i32
    %c0_i32_1 = arith.constant 0 : i32
    return %c0_i32, %c0_i32_0 : i32, i32
  }
  func.func @transform_11(%arg0: i32) -> (i32, i32) {
    %c0_i32 = arith.constant 0 : i32
    %c0_i32_0 = arith.constant 0 : i32
    %c0_i32_1 = arith.constant 0 : i32
    return %c0_i32, %c0_i32_0 : i32, i32
  }
  func.func @transform_12(%arg0: i32) -> (i32, i32, i32) {
    %c0_i32 = arith.constant 0 : i32
    %c0_i32_0 = arith.constant 0 : i32
    %c0_i32_1 = arith.constant 0 : i32
    return %arg0, %c0_i32, %c0_i32_0 : i32, i32, i32
  }
}

</mosaic_0001>

<bundles_post_ra>
// kernel: tpu_custom_call.1
= control target key start
LH: loop header
LB: loop body
LE: loop exit
PB: predicated region body
PF: predicated region fallthrough
CT: control target
= control target key end

     0   :  { %s3078_s0 = inlined_call_operand.hbm [shape: f32[2,64,128], index: 0, kind: input, shape index: {}]   ;;  %s3079_s1 = inlined_call_operand.hbm [shape: f32[128,128], index: 1, kind: input, shape index: {}]   ;;  %s3080_s2 = inlined_call_operand.vmem [shape: f32[1,128], index: 2, kind: input, shape index: {}]   ;;  %s3081_s3 = inlined_call_operand.vmem [shape: f32[1,128], index: 3, kind: input, shape index: {}]   ;;  %s3082_s4 = inlined_call_operand.hbm [shape: bf16[128,128], index: 4, kind: input, shape index: {}]   ;;  %s3083_s5 = inlined_call_operand.vmem [shape: f32[1,128], index: 5, kind: input, shape index: {}]   ;;  %s3084_s6 = inlined_call_operand.hbm [shape: bf16[128,128], index: 6, kind: input, shape index: {}]   ;;  %s3085_s7 = inlined_call_operand.vmem [shape: f32[1,128], index: 7, kind: input, shape index: {}]   ;;  %s3086_s8 = inlined_call_operand.hbm [shape: bf16[128,128], index: 8, kind: input, shape index: {}]   ;;  %s3087_s9 = inlined_call_operand.vmem [shape: f32[1,128], index: 9, kind: input, shape index: {}]   ;;  %s3088_s10 = inlined_call_operand.hbm [shape: bf16[128,128], index: 10, kind: input, shape index: {}]   ;;  %s3089_s11 = inlined_call_operand.vmem [shape: f32[1,128], index: 11, kind: input, shape index: {}]   ;;  %s3090_s12 = inlined_call_operand.hbm [shape: f32[2,64,128], index: 12, kind: output, shape index: {}]  }
   0x1   :  { %3102 = sst [smem:[#allocation19_spill]] %s3079_s1 }
   0x2   :  { %3103 = sst [smem:[#allocation20_spill]] %s3082_s4 }
   0x3   :  { %3104 = sst [smem:[#allocation21_spill]] %s3084_s6 }
   0x4   :  { %3105 = sst [smem:[#allocation22_spill]] %s3086_s8 }
   0x5   :  { %3106 = sst [smem:[#allocation23_spill]] %s3089_s11 }
   0x6   :  { %3107 = sst [smem:[#allocation24_spill]] %s3090_s12 }
   0x7   :  { %17 = vsyncpa [#allocation3], 0 }
   0x8   :  { %19 = vsyncpa [#allocation3 + $0x1], 0 }
   0x9   :  { %20 = vsyncpa [#allocation6], 0 }
   0xa   :  { %21 = vsyncpa [#allocation9], 0 }
   0xb   :  { %22 = vsyncpa [#allocation12], 0 }
   0xc   :  { %23 = vsyncpa [#allocation4], 0 }
   0xd   :  { %25 = vsyncpa [#allocation4 + $0x1], 0  ;;  %s2516_s21 = smov 0   ;;  %s2518_s22 = smov 0  }
   0xe   :  { %s2520_s23 = smov 0   ;;  %s2522_s24 = smov 0  }
   0xf LB: > { %s3108_s1 = sld [smem:[#allocation19_spill]]  ;;  %s2540_s28 = sadd.s32 4294967295, %s2438_s24   ;;  %s2438_s24 = sphi %s2522_s24, %s3134_s24   ;;  %s2434_s23 = sphi %s2520_s23, %s3133_s23   ;;  %s2430_s22 = sphi %s2518_s22, %s3132_s22   ;;  %s2426_s21 = sphi %s2516_s21, %s3131_s21  }
  0x10   : > { %p1837_p0 = scmp.ge.s32.totalorder %s2438_s24, 1  ;;  %p52_p1 = scmp.eq.s32.totalorder %s2540_s28, 0 }
  0x11   : > { %p319_p2 = scmp.lt.s32.totalorder %s2438_s24, 3  ;;  %s2440_s30 = smov [#allocation5]  }
  0x12   : > { %s332_s13 = sshll.u32 %s2440_s30, 4  ;;  %s3111_s6 = sld [smem:[#allocation21_spill]]  ;;  %s333_s13 = int_to_ptr.vmem [resolvable:$true] %s332_s13 }
  0x13   : > { %p2545_p3 = pnand %p1837_p0, %p319_p2  ;;  %s3092_s18 = smov 128  }
  0x14   : > { %s3093_s19 = smov 8   ;;  %s2443_s20 = smov [#allocation8]  }
  0x15   : > { %s330_s27 = sshll.u32 %s3108_s1, 4  ;;  %p2062_p4 = pneg %p2545_p3  ;;  %s331_s27 = int_to_ptr.hbm [resolvable:$true] %s330_s27 }
  0x16   : > { %s369_s25 = sshll.u32 %s2443_s20, 4  ;;  %s3112_s4 = sld [smem:[#allocation20_spill]]  ;;  %s370_s25 = int_to_ptr.vmem [resolvable:$true] %s369_s25 }
  0x17   : > { %p2554_p6 = pnand %p2062_p4, %p52_p1  ;;  %s2444_s15 = smov 64  }
  0x18   : > { %s367_s17 = sshll.u32 %s3111_s6, 4  ;;  %s2445_s16 = smov 4   ;;  %s368_s17 = int_to_ptr.hbm [resolvable:$true] %s367_s17 }
  0x19   : > { %2065 = dma.hbm_to_vmem [thread:$0]  (!%p2554_p6), %s331_s27, 2048, %s333_s13, [#allocation6], %s3092_s18, %s3092_s18, %s3093_s19  }
  0x1a   : > { %2071 = dma.hbm_to_vmem [thread:$0]  (!%p2554_p6), %s368_s17, 1024, %s370_s25, [#allocation9], %s2444_s15, %s2444_s15, %s2445_s16  }
  0x1b   : > { %s3113_s8 = sld [smem:[#allocation22_spill]]  ;;  %s2446_s27 = smov [#allocation7]  }
  0x1c   : > { %s350_s1 = sshll.u32 %s3112_s4, 4  ;;  %s352_s13 = sshll.u32 %s2446_s27, 4  ;;  %s351_s1 = int_to_ptr.hbm [resolvable:$true] %s350_s1  ;;  %s353_s13 = int_to_ptr.vmem [resolvable:$true] %s352_s13 }
  0x1d   : > { %2068 = dma.hbm_to_vmem [thread:$0]  (!%p2554_p6), %s351_s1, 1024, %s353_s13, [#allocation6], %s2444_s15, %s2444_s15, %s2445_s16  }
  0x1e   : > { %s2447_s20 = smov [#allocation10]   ;;  %s401_s6 = sshll.u32 %s3088_s10, 4  ;;  %s402_s6 = int_to_ptr.hbm [resolvable:$true] %s401_s6 }
  0x1f   : > { %s386_s17 = sshll.u32 %s2447_s20, 4  ;;  %s2448_s12 = smov [#allocation11]   ;;  %s387_s17 = int_to_ptr.vmem [resolvable:$true] %s386_s17 }
  0x20   : > { %s403_s30 = sshll.u32 %s2448_s12, 4  ;;  %s1836_s1 = sadd.s32 4294967294, %s2438_s24   ;;  %s404_s30 = int_to_ptr.vmem [resolvable:$true] %s403_s30 }
  0x21   : > { %s384_s11 = sshll.u32 %s3113_s8, 4  ;;  %s2585_s27 = sadd.s32 1, %s2438_s24   ;;  %s385_s11 = int_to_ptr.hbm [resolvable:$true] %s384_s11 }
  0x22   : > { %2074 = dma.hbm_to_vmem [thread:$0]  (!%p2554_p6), %s385_s11, 1024, %s387_s17, [#allocation9], %s2444_s15, %s2444_s15, %s2445_s16  }
  0x23   : > { %2077 = dma.hbm_to_vmem [thread:$0]  (!%p2554_p6), %s402_s6, 1024, %s404_s30, [#allocation12], %s2444_s15, %s2444_s15, %s2445_s16  }
  0x24   : > { %s38_s13 = sadd.s32 1, %s2434_s23  ;;  %s35_s20 = ssub.s32 %s2438_s24, %s2585_s27 }
  0x25   : > { %p45_p7 = scmp.ne.s32.totalorder %s2434_s23, %s2430_s22  ;;  %p36_p8 = scmp.eq.s32.totalorder %s35_s20, 0 }
  0x26   : > { %p46_p9 = scmp.eq.s32.totalorder %s2438_s24, 0  ;;  %p51_p10 = scmp.ne.s32.totalorder %s2430_s22, %s2426_s21 }
  0x27   : > { %p306_p11 = scmp.eq.s32.totalorder %s2540_s28, 1  ;;  %p312_p0 = scmp.eq.s32.totalorder %s1836_s1, 1 }
  0x28   : > { %s2597_s11 = scalar_select %p36_p8, %s2434_s23, %s38_s13  }
  0x29   : > { %p2601_p12 = por %p52_p1, %p51_p10  ;;  %p2605_p13 = por %p306_p11, %p45_p7 }
  0x2a   : > { %p47_p2 = por %p46_p9, %p45_p7  ;;  %s420_s16 = sand.u32 1, %s2434_s23  }
  0x2b   : > { %p2610_p4 = por %p312_p0, %p51_p10  ;;  %p2091_p6 = scmp.lt.s32.totalorder %s2438_s24, 2 }
  0x2c   : > { %s1844_s25 = sshll.u32 %s420_s16, 6  ;;  %s1992_s26 = sshll.u32 %s2438_s24, 6 }
  0x2d   : > { %s429_s30 = scalar_lea.hbm %s3078_s0, %s1992_s26  ;;  %s424_s20 = scalar_lea.vmem [#allocation2], %s1844_s25 }
  0x2e   : > { %s430_s13 = sshll.u32 %s429_s30, 4  ;;  %s432_s18 = sshll.u32 %s424_s20, 4  ;;  %s431_s13 = int_to_ptr.hbm [resolvable:$true] %s430_s13  ;;  %s433_s18 = int_to_ptr.vmem [resolvable:$true] %s432_s18 }
  0x2f   : > { %p2619_p8 = pnand %p2091_p6, %p47_p2  ;;  %s421_s19 = scalar_lea.sflag [#allocation3], %s420_s16 }
  0x30   : > { %s2330_s4 = sshra.s32 %s431_s13, 4  ;;  %s2337_s25 = scalar_lea.hbm %s3078_s0, 128  ;;  %s2331_s4 = int_to_ptr.hbm [resolvable:$true] %s2330_s4 }
  0x31   : > { %s2332_s8 = scalar_lea.hbm %s2331_s4, 64  ;;  %p2334_p9 = pneg %p2619_p8 }
  0x32   : > { %p2333_p7 = scmp.ne.s32.totalorder %s2331_s4, %s2332_s8  ;;  %p2338_p0 = scmp.lt.s32.totalorder %s2331_s4, %s3078_s0 }
  0x33   : > { %p2339_p2 = scmp.lt.s32.totalorder %s2337_s25, %s2332_s8 }
  0x34   : > { %p2335_p10 = pnand %p2334_p9, %p2333_p7 }
  0x35   : > { %p2340_p6 = por %p2339_p2, %p2338_p0 }
  0x36   : > { %p2336_p11 = pneg %p2335_p10 }
  0x38   : > { %p2341_p5 = pnand %p2340_p6, %p2336_p11 }
  0x3a   : > { %2344 = shalt.err (!%p2341_p5)
}
  0x3b   : > { %s3118_s16 = smov 8   ;;  %s3119_s20 = smov 128  }
  0x3c   : > { %2081 = dma.hbm_to_vmem [thread:$0]  (!%p2619_p8), %s431_s13, 1024, %s433_s18, %s421_s19, %s3119_s20, %s3119_s20, %s3118_s16  }
  0x3d   : > { %444 = sbr.rel (%p2545_p3) target bundleno = 1158 (0x486), region = 68  ;;  %s2639_s26 = sand.u32 (!%p2545_p3), 1, %s2430_s22  }
  0x3e   : > { %s1848_s4 = sshll.u32 (!%p2545_p3), %s2639_s26, 6  ;;  %s447_s8 = scalar_lea.sflag (!%p2545_p3), [#allocation3], %s2639_s26 }
  0x3f   : > { %s2645_s6 = scalar_lea.vmem (!%p2545_p3), [#allocation2], %s1848_s4 }
  0x42   : > { %2405 = dma.done.wait (%p2601_p12), %s447_s8, 1024  }
  0x43   : > { %2407 = vsyncadd (%p2601_p12), %s447_s8, 4294966272 }
  0x44   : > { %2409 = dma.done.wait (%p52_p1), [#allocation6], 3072  }
  0x45   : > { %2411 = vsyncadd (%p52_p1), [#allocation6], 4294964224 }
  0x46   : > { %2413 = dma.done.wait (%p52_p1), [#allocation9], 2048  }
  0x47   : > { %2415 = vsyncadd (%p52_p1), [#allocation9], 4294965248 }
  0x48   : > { %2417 = dma.done.wait (%p52_p1), [#allocation12], 1024  }
  0x49   : > { %2419 = vsyncadd (%p52_p1), [#allocation12], 4294966272  ;;  %v577_v0 = vld [vmem:[#allocation5 + $0x78] sm:$0xff]  ;;  %v576_v1 = vld [vmem:[#allocation5 + $0x70] sm:$0xff]  ;;  %vm560_vm0 = vcmask 1040384   ;;  %vm1392_vm4 = vcmask 523264  }
  0x4a   : > { %v575_v2 = vld [vmem:[#allocation5 + $0x68] sm:$0xff]  ;;  %v2663_v3 = vand.u32 4294901760, %v577_v0  ;;  %v2665_v4 = vand.u32 4294901760, %v576_v1  ;;  %v574_v6 = vld [vmem:[#allocation5 + $0x60] sm:$0xff]  ;;  %v573_v7 = vld [vmem:[#allocation5 + $0x58] sm:$0xff]  ;;  %s3128_s29 = sld [smem:[#allocation23_spill]] }
  0x4b   : > { %v2667_v5 = vand.u32 4294901760, %v575_v2  ;;  %v572_v8 = vld [vmem:[#allocation5 + $0x50] sm:$0xff]  ;;  %v2669_v9 = vand.u32 4294901760, %v574_v6  ;;  %v2671_v10 = vand.u32 4294901760, %v573_v7  ;;  %v571_v12 = vld [vmem:[#allocation5 + $0x48] sm:$0xff]  ;;  %v570_v13 = vld [vmem:[#allocation5 + $0x40] sm:$0xff] }
  0x4c   : > { %v2673_v11 = vand.u32 4294901760, %v572_v8  ;;  %579 = vmatpush.msra.mxu0 %v2663_v3  ;;  %v2677_v14 = vsub.f32 %v577_v0, %v2663_v3  ;;  %v2680_v15 = vsub.f32 %v576_v1, %v2665_v4  ;;  %v2685_v17 = vand.u32 4294901760, %v571_v12  ;;  %v569_v18 = vld [vmem:[#allocation5 + $0x38] sm:$0xff]  ;;  %775 = vmatpush.msra.mxu3 %v2663_v3  ;;  %v568_v26 = vld [vmem:[#allocation5 + $0x30] sm:$0xff]  ;;  %v567_v34 = vld [vmem:[#allocation5 + $0x28] sm:$0xff]  ;;  %s3027_s18 = scalar_lea.vmem [#allocation13], %s1848_s4 }
  0x4d   : > { %v2683_v16 = vsub.f32 %v575_v2, %v2667_v5  ;;  %v2689_v19 = vsub.f32 %v574_v6, %v2669_v9  ;;  %v2692_v20 = vsub.f32 %v573_v7, %v2671_v10  ;;  %v2701_v25 = vand.u32 4294901760, %v570_v13  ;;  %v566_v41 = vld [vmem:[#allocation5 + $0x20] sm:$0xff]  ;;  %v565_v47 = vld [vmem:[#allocation5 + $0x18] sm:$0xff]  ;;  %v564_v55 = vld [vmem:[#allocation5 + $0x10] sm:$0xff]  ;;  %s2025_s4 = sshll.u32 %s2540_s28, 6  ;;  %s3129_s13 = sld [smem:[#allocation24_spill]] }
  0x4e   : > { %v2695_v21 = vsub.f32 %v572_v8, %v2673_v11  ;;  %581 = vmatpush.msra.mxu0 %v2665_v4  ;;  %v621_v22 = vand.u32 4294901760, %v2677_v14  ;;  %v627_v23 = vand.u32 4294901760, %v2680_v15  ;;  %722 = vmatpush.msra.mxu2 %v2677_v14  ;;  %v2705_v28 = vand.u32 4294901760, %v569_v18  ;;  %v563_v61 = vld [vmem:[#allocation5 + $0x8] sm:$0xff]  ;;  %v562_v1 = vld [vmem:[#allocation5] sm:$0xff]  ;;  %s1712_s25 = sshll.u32 %s3027_s18, 4  ;;  %s1713_s25 = int_to_ptr.vmem [resolvable:$true] %s1712_s25 }
  0x4f   : > { %v633_v24 = vand.u32 4294901760, %v2683_v16  ;;  %v639_v27 = vand.u32 4294901760, %v2689_v19  ;;  %v2708_v29 = vsub.f32 %v571_v12, %v2685_v17  ;;  %777 = vmatpush.msra.mxu3 %v2665_v4  ;;  %v645_v33 = vand.u32 4294901760, %v2692_v20  ;;  %v2783_v2 = vld [vmem:[%s2645_s6] sm:$0xff]  ;;  %v2791_v8 = vld [vmem:[%s2645_s6 + $0x8] sm:$0xff]  ;;  %s1700_s30 = scalar_lea.sflag [#allocation4], %s2639_s26 }
  0x50   : > { %583 = vmatpush.msra.mxu0 %v2667_v5  ;;  %v622_v30 = vsub.f32 %v2677_v14, %v621_v22  ;;  %v628_v31 = vsub.f32 %v2680_v15, %v627_v23  ;;  %725 = vmatpush.msra.mxu2 %v2680_v15  ;;  %v651_v35 = vand.u32 4294901760, %v2695_v21  ;;  %v2724_v36 = vand.u32 4294901760, %v568_v26 }
  0x51   : > { %v634_v32 = vsub.f32 %v2683_v16, %v633_v24  ;;  %779 = vmatpush.msra.mxu3 %v2667_v5  ;;  %v640_v39 = vsub.f32 %v2689_v19, %v639_v27  ;;  %v2732_v40 = vsub.f32 %v570_v13, %v2701_v25  ;;  %v657_v42 = vand.u32 4294901760, %v2708_v29 }
  0x52   : > { %v623_v37 = vand.u32 4294901760, %v622_v30  ;;  %585 = vmatpush.msra.mxu0 %v2669_v9  ;;  %v629_v38 = vand.u32 4294901760, %v628_v31  ;;  %728 = vmatpush.msra.mxu2 %v2683_v16  ;;  %v646_v44 = vsub.f32 %v2692_v20, %v645_v33  ;;  %v2741_v45 = vand.u32 4294901760, %v567_v34 }
  0x53   : > { %781 = vmatpush.msra.mxu3 %v2669_v9  ;;  %v635_v43 = vand.u32 4294901760, %v634_v32  ;;  %v2744_v46 = vsub.f32 %v569_v18, %v2705_v28  ;;  %v2746_v48 = vand.u32 4294901760, %v566_v41  ;;  %v2749_v49 = vsub.f32 %v568_v26, %v2724_v36  ;;  %v2801_v26 = vld [vmem:[%s2645_s6 + $0x10] sm:$0xff]  ;;  %s1711_s1 = scalar_lea.hbm %s3129_s13, %s2025_s4 }
  0x54   : > { %624 = vmatpush.msra.mxu1 %v623_v37  ;;  %587 = vmatpush.msra.mxu0 %v2671_v10  ;;  %v641_v50 = vand.u32 4294901760, %v640_v39  ;;  %v652_v51 = vsub.f32 %v2695_v21, %v651_v35  ;;  %v3100_v52 = vand.u32 4294901760, %v2732_v40  ;;  %v658_v53 = vsub.f32 %v2708_v29, %v657_v42  ;;  %s1714_s12 = sshll.u32 %s1711_s1, 4  ;;  %s1715_s12 = int_to_ptr.hbm [resolvable:$true] %s1714_s12 }
  0x55   : > { %731 = vmatpush.msra.mxu2 %v2689_v19  ;;  %783 = vmatpush.msra.mxu3 %v2671_v10  ;;  %v2761_v54 = vand.u32 4294901760, %v565_v47  ;;  %v647_v56 = vand.u32 4294901760, %v646_v44  ;;  %v3098_v57 = vand.u32 4294901760, %v2744_v46  ;;  %v2768_v58 = vsub.f32 %v567_v34, %v2741_v45  ;;  %s2374_s16 = sshra.s32 %s1715_s12, 4  ;;  %s2375_s16 = int_to_ptr.hbm [resolvable:$true] %s2374_s16 }
  0x56   : > { %630 = vmatpush.msra.mxu1 %v629_v38  ;;  %589 = vmatpush.msra.mxu0 %v2673_v11  ;;  %v3096_v59 = vand.u32 4294901760, %v2749_v49  ;;  %v2772_v60 = vsub.f32 %v566_v41, %v2746_v48  ;;  %v653_v62 = vand.u32 4294901760, %v652_v51  ;;  %v664_v63 = vsub.f32 %v2732_v40, %v3100_v52  ;;  %v2820_v41 = vld [vmem:[%s2645_s6 + $0x18] sm:$0xff]  ;;  %s2376_s28 = scalar_lea.hbm %s2375_s16, 64  ;;  %p2381_p12 = scmp.lt.s32.totalorder %s2375_s16, %s3129_s13 }
  0x57   : > { %734 = vmatpush.msra.mxu2 %v2692_v20  ;;  %785 = vmatpush.msra.mxu3 %v2673_v11  ;;  %v2780_v0 = vand.u32 4294901760, %v564_v55  ;;  %v659_v6 = vand.u32 4294901760, %v658_v53  ;;  %v2786_v7 = vsub.f32 %v565_v47, %v2761_v54  ;;  %v670_v12 = vsub.f32 %v2744_v46, %v3098_v57  ;;  %v2880_v57 = vld [vmem:[%s2645_s6 + $0x38] sm:$0xff]  ;;  %p2377_p1 = scmp.ne.s32.totalorder %s2375_s16, %s2376_s28 }
  0x58   : > { %636 = vmatpush.msra.mxu1 %v635_v43  ;;  %591 = vmatpush.msra.mxu0 %v2685_v17  ;;  %v3094_v13 = vand.u32 4294901760, %v2768_v58  ;;  %v2798_v18 = vand.u32 4294901760, %v563_v61  ;;  %v526_v30 = vadd.f32 %v2791_v8, %v2783_v2  ;;  %v676_v31 = vsub.f32 %v2749_v49, %v3096_v59 }
  0x59   : > { %737 = vmatpush.msra.mxu2 %v2695_v21  ;;  %787 = vmatpush.msra.mxu3 %v2685_v17  ;;  %v3095_v32 = vand.u32 4294901760, %v2772_v60  ;;  %v2809_v34 = vand.u32 4294901760, %v562_v1  ;;  %v539_v37 = vmul.f32 %v2783_v2, %v2783_v2  ;;  %v665_v38 = vand.u32 4294901760, %v664_v63  ;;  %p2378_p3 = pnand %p2377_p1, %p2605_p13 }
  0x5a   : > { %642 = vmatpush.msra.mxu1 %v641_v50  ;;  %593 = vmatpush.msra.mxu0 %v2701_v25  ;;  %v2817_v39 = vsub.f32 %v564_v55, %v2780_v0  ;;  %v527_v43 = vadd.f32 %v526_v30, %v2801_v26  ;;  %v540_v44 = vmul.f32 %v2791_v8, %v2791_v8  ;;  %v3097_v47 = vand.u32 4294901760, %v2786_v7 }
  0x5b   : > { %740 = vmatpush.msra.mxu2 %v2708_v29  ;;  %789 = vmatpush.msra.mxu3 %v2701_v25  ;;  %v541_v50 = vmul.f32 %v2801_v26, %v2801_v26  ;;  %v671_v51 = vand.u32 4294901760, %v670_v12  ;;  %v682_v53 = vsub.f32 %v2768_v58, %v3094_v13  ;;  %v2835_v55 = vsub.f32 %v563_v61, %v2798_v18  ;;  %v2854_v13 = vld [vmem:[%s2645_s6 + $0x28] sm:$0xff]  ;;  %p2379_p5 = pneg %p2378_p3 }
  0x5c   : > { %648 = vmatpush.msra.mxu1 %v647_v56  ;;  %595 = vmatpush.msra.mxu0 %v2705_v28  ;;  %v2838_v56 = vld [vmem:[%s2645_s6 + $0x20] sm:$0xff]  ;;  %v688_v63 = vsub.f32 %v2772_v60, %v3095_v32  ;;  %v547_v12 = vadd.f32 %v540_v44, %v539_v37  ;;  %v677_v61 = vand.u32 4294901760, %v676_v31  ;;  %v3099_v30 = vand.u32 4294901760, %v2817_v39 }
  0x5d   : > { %743 = vmatpush.msra.mxu2 %v2732_v40  ;;  %791 = vmatpush.msra.mxu3 %v2705_v28  ;;  %v543_v37 = vmul.f32 %v2838_v56, %v2838_v56  ;;  %v683_v31 = vand.u32 4294901760, %v682_v53  ;;  %v3101_v44 = vand.u32 4294901760, %v2835_v55 }
  0x5e   : > { %654 = vmatpush.msra.mxu1 %v653_v62  ;;  %597 = vmatpush.msra.mxu0 %v2724_v36  ;;  %v528_v62 = vadd.f32 %v527_v43, %v2820_v41  ;;  %v2851_v43 = vsub.f32 %v562_v1, %v2809_v34  ;;  %v694_v1 = vsub.f32 %v2786_v7, %v3097_v47  ;;  %v689_v53 = vand.u32 4294901760, %v688_v63 }
  0x5f   : > { %746 = vmatpush.msra.mxu2 %v2744_v46  ;;  %793 = vmatpush.msra.mxu3 %v2724_v36 }
  0x60   : > { %660 = vmatpush.msra.mxu1 %v659_v6  ;;  %599 = vmatpush.msra.mxu0 %v2741_v45  ;;  %v542_v6 = vmul.f32 %v2820_v41, %v2820_v41  ;;  %v529_v32 = vadd.f32 %v528_v62, %v2838_v56  ;;  %v2867_v62 = vld [vmem:[%s2645_s6 + $0x30] sm:$0xff]  ;;  %v711_v47 = vand.u32 4294901760, %v2851_v43  ;;  %v695_v63 = vand.u32 4294901760, %v694_v1 }
  0x61   : > { %749 = vmatpush.msra.mxu2 %v2749_v49  ;;  %795 = vmatpush.msra.mxu3 %v2741_v45 }
  0x62   : > { %666 = vmatpush.msra.mxu1 %v665_v38  ;;  %601 = vmatpush.msra.mxu0 %v2746_v48  ;;  %v548_v38 = vadd.f32 %v547_v12, %v541_v50  ;;  %v530_v59 = vadd.f32 %v529_v32, %v2854_v13  ;;  %v544_v50 = vmul.f32 %v2854_v13, %v2854_v13 }
  0x63   : > { %752 = vmatpush.msra.mxu2 %v2768_v58  ;;  %797 = vmatpush.msra.mxu3 %v2746_v48  ;;  %v700_v12 = vsub.f32 %v2817_v39, %v3099_v30 }
  0x64   : > { %672 = vmatpush.msra.mxu1 %v671_v51  ;;  %603 = vmatpush.msra.mxu0 %v2761_v54  ;;  %v549_v51 = vadd.f32 %v548_v38, %v542_v6  ;;  %v531_v32 = vadd.f32 %v530_v59, %v2867_v62  ;;  %v545_v6 = vmul.f32 %v2867_v62, %v2867_v62 }
  0x65   : > { %755 = vmatpush.msra.mxu2 %v2772_v60  ;;  %799 = vmatpush.msra.mxu3 %v2761_v54  ;;  %v706_v38 = vsub.f32 %v2835_v55, %v3101_v44  ;;  %v546_v59 = vmul.f32 %v2880_v57, %v2880_v57 }
  0x66   : > { %678 = vmatpush.msra.mxu1 %v677_v61  ;;  %605 = vmatpush.msra.mxu0 %v2780_v0  ;;  %v550_v61 = vadd.f32 %v549_v51, %v543_v37  ;;  %v532_v30 = vadd.f32 %v531_v32, %v2880_v57  ;;  %v701_v37 = vand.u32 4294901760, %v700_v12 }
  0x67   : > { %758 = vmatpush.msra.mxu2 %v2786_v7  ;;  %801 = vmatpush.msra.mxu3 %v2780_v0  ;;  %v707_v32 = vand.u32 4294901760, %v706_v38  ;;  %v1996_v38 = vld [vmem:[#allocation7 + $0x18] sm:$0xff] }
  0x68   : > { %684 = vmatpush.msra.mxu1 %v683_v31  ;;  %607 = vmatpush.msra.mxu0 %v2798_v18  ;;  %v551_v52 = vadd.f32 %v550_v61, %v544_v50  ;;  %v712_v31 = vsub.f32 %v2851_v43, %v711_v47  ;;  %v533_v1 = vrot.slane %v532_v30, 4 }
  0x69   : > { %761 = vmatpush.msra.mxu2 %v2817_v39  ;;  %803 = vmatpush.msra.mxu3 %v2798_v18 }
  0x6a   : > { %690 = vmatpush.msra.mxu1 %v689_v53  ;;  %609 = vmatpush.msra.mxu0 %v2809_v34  ;;  %v552_v51 = vadd.f32 %v551_v52, %v545_v6  ;;  %v534_v44 = vadd.f32 %v533_v1, %v532_v30  ;;  %v713_v53 = vand.u32 4294901760, %v712_v31  ;;  %v1997_v30 = vld [vmem:[#allocation7 + $0x20] sm:$0xff] }
  0x6b   : > { %764 = vmatpush.msra.mxu2 %v2835_v55  ;;  %805 = vmatpush.msra.mxu3 %v2809_v34 }
  0x6c   : > { %816 = vmatpush.msrb.mxu0 %v621_v22  ;;  %696 = vmatpush.msra.mxu1 %v695_v63  ;;  %v553_v50 = vadd.f32 %v552_v51, %v546_v59  ;;  %v535_v12 = vrot.slane %v534_v44, 2  ;;  %v2004_v59 = vld [vmem:[#allocation8 + $0x18] sm:$0xff]  ;;  %v1995_v51 = vld [vmem:[#allocation7 + $0x10] sm:$0xff] }
  0x6d   : > { %767 = vmatpush.msra.mxu2 %v2851_v43  ;;  %v2005_v43 = vld [vmem:[#allocation8 + $0x20] sm:$0xff] }
  0x6e   : > { %820 = vmatpush.msrb.mxu0 %v627_v23  ;;  %702 = vmatpush.msra.mxu1 %v701_v37  ;;  %v554_v14 = vrot.slane %v553_v50, 4  ;;  %v536_v22 = vadd.f32 %v535_v12, %v534_v44  ;;  %v2013_v44 = vld [vmem:[#allocation10 + $0x20] sm:$0xff]  ;;  %v2012_v37 = vld [vmem:[#allocation10 + $0x18] sm:$0xff] }
  0x70   : > { %824 = vmatpush.msrb.mxu0 %v633_v24  ;;  %708 = vmatpush.msra.mxu1 %v707_v32  ;;  %v555_v52 = vadd.f32 %v554_v14, %v553_v50  ;;  %v537_v15 = vrot.slane %v536_v22, 1  ;;  %v2003_v32 = vld [vmem:[#allocation8 + $0x10] sm:$0xff]  ;;  %v1994_v14 = vld [vmem:[#allocation7 + $0x8] sm:$0xff] }
  0x71   : > { %v2011_v50 = vld [vmem:[#allocation10 + $0x10] sm:$0xff] }
  0x72   : > { %828 = vmatpush.msrb.mxu0 %v639_v27  ;;  %714 = vmatpush.msra.mxu1 %v713_v53  ;;  %v556_v23 = vrot.slane %v555_v52, 2  ;;  %v538_v19 = vadd.f32 %v537_v15, %v536_v22  ;;  %v2002_v22 = vld [vmem:[#allocation8 + $0x8] sm:$0xff] }
  0x74   : > { %883 = vmatpush.msrb.mxu1 %v2663_v3  ;;  %832 = vmatpush.msrb.mxu0 %v645_v33  ;;  %v557_v16 = vadd.f32 %v556_v23, %v555_v52  ;;  %v3120_v3 = vand.u32 4294901760, %v2732_v40  ;;  %v2010_v52 = vld [vmem:[#allocation10 + $0x8] sm:$0xff]  ;;  %v1993_v23 = vld [vmem:[#allocation7] sm:$0xff] }
  0x76   : > { %885 = vmatpush.msrb.mxu1 %v2665_v4  ;;  %836 = vmatpush.msrb.mxu0 %v651_v35  ;;  %v558_v24 = vrot.slane %v557_v16, 1  ;;  %v3121_v4 = vand.u32 4294901760, %v2744_v46 }
  0x78   : > { %887 = vmatpush.msrb.mxu1 %v2667_v5  ;;  %840 = vmatpush.msrb.mxu0 %v657_v42  ;;  %v559_v20 = vadd.f32 %v558_v24, %v557_v16  ;;  %v3122_v5 = vand.u32 4294901760, %v2749_v49  ;;  %v2008_v42 = vld [vmem:[#allocation8 + $0x38] sm:$0xff]  ;;  %v2001_v16 = vld [vmem:[#allocation8] sm:$0xff] }
  0x79   : > { %1165 = vmatpush.bf16.msrb.mxu3 %v2008_v42  ;;  %v2009_v24 = vld [vmem:[#allocation10] sm:$0xff] }
  0x7a   : > { %889 = vmatpush.msrb.mxu1 %v2669_v9  ;;  %844 = vmatpush.msrb.mxu0 %v3120_v3  ;;  %v561_v21 = vsel %vm560_vm0, %v538_v19, %v559_v20  ;;  %v3123_v9 = vand.u32 4294901760, %v2768_v58  ;;  %v1999_v58 = vld [vmem:[#allocation7 + $0x30] sm:$0xff] }
  0x7b   : > { %v610_v27 = vand.u32 4294901760, %v561_v21 }
  0x7c   : > { %891 = vmatpush.msrb.mxu1 %v2671_v10  ;;  %848 = vmatpush.msrb.mxu0 %v3121_v4  ;;  %v3124_v10 = vand.u32 4294901760, %v2772_v60  ;;  %v2015_v60 = vld [vmem:[#allocation10 + $0x30] sm:$0xff] }
  0x7d   : > { %v611_v29 = vsub.f32 %v561_v21, %v610_v27  ;;  %716 = vmatmul.f32.vlgmr.msra.gmra.mxu1 %v610_v27 }
  0x7e   : > { %893 = vmatpush.msrb.mxu1 %v2673_v11  ;;  %852 = vmatpush.msrb.mxu0 %v3122_v5  ;;  %v3125_v11 = vand.u32 4294901760, %v2786_v7  ;;  %v2141_v5 = vld [vmem:[%s3080_s2] ss:$0 sm:$0xff] }
  0x7f   : > { %770 = vmatmul.f32.vlgmr.msra.gmra.mxu2 %v611_v29  ;;  %v612_v33 = vand.u32 4294901760, %v611_v29 }
  0x80   : > { %895 = vmatpush.msrb.mxu1 %v2685_v17  ;;  %856 = vmatpush.msrb.mxu0 %v3123_v9  ;;  %v3126_v17 = vand.u32 4294901760, %v2817_v39  ;;  %v2014_v39 = vld [vmem:[#allocation10 + $0x28] sm:$0xff] }
  0x81   : > { %v613_v35 = vsub.f32 %v611_v29, %v612_v33  ;;  %809 = vmatmul.f32.vlgmr.msra.gmra.mxu3 %v612_v33 }
  0x82   : > { %897 = vmatpush.msrb.mxu1 %v2701_v25  ;;  %860 = vmatpush.msrb.mxu0 %v3124_v10  ;;  %v3127_v25 = vand.u32 4294901760, %v2835_v55 }
  0x83   : > { %v614_v40 = vand.u32 4294901760, %v613_v35  ;;  %v942_v35 = vld [vmem:[%s3081_s3] sm:$0x1] }
  0x84   : > { %899 = vmatpush.msrb.mxu1 %v2705_v28  ;;  %864 = vmatpush.msrb.mxu0 %v3125_v11 }
  0x85   : > { %615 = vmatmul.f32.vlgmr.msra.gmra.mxu0 %v614_v40 }
  0x86   : > { %901 = vmatpush.msrb.mxu1 %v2724_v36  ;;  %868 = vmatpush.msrb.mxu0 %v3126_v17  ;;  %v2000_v36 = vld [vmem:[#allocation7 + $0x38] sm:$0xff] }
  0x87   : > { %1068 = vmatpush.bf16.msrb.mxu2 %v2000_v36 }
  0x88   : > { %903 = vmatpush.msrb.mxu1 %v2741_v45  ;;  %872 = vmatpush.msrb.mxu0 %v3127_v25  ;;  %v2016_v45 = vld [vmem:[#allocation10 + $0x38] sm:$0xff] }
  0x8a   : > { %905 = vmatpush.msrb.mxu1 %v2746_v48  ;;  %876 = vmatpush.msrb.mxu0 %v711_v47 }
  0x8b   : > { %1069 = vmatpush.bf16.msrb.mxu2 %v1999_v58 }
  0x8c   : > { %907 = vmatpush.msrb.mxu1 %v2761_v54  ;;  %1262 = vmatpush.bf16.msra.mxu0 %v2016_v45  ;;  %v2007_v54 = vld [vmem:[#allocation8 + $0x30] sm:$0xff] }
  0x8d   : > { %878 = vmatmul.f32.vlgmr.msrb.gmra.mxu0 %v610_v27  ;;  %1166 = vmatpush.bf16.msrb.mxu3 %v2007_v54 }
  0x8e   : > { %909 = vmatpush.msrb.mxu1 %v2780_v0 }
  0x90   : > { %911 = vmatpush.msrb.mxu1 %v2798_v18  ;;  %1263 = vmatpush.bf16.msra.mxu0 %v2015_v60  ;;  %v1998_v18 = vld [vmem:[#allocation7 + $0x28] sm:$0xff] }
  0x91   : > { %1070 = vmatpush.bf16.msrb.mxu2 %v1998_v18 }
  0x92   : > { %913 = vmatpush.msrb.mxu1 %v2809_v34  ;;  %v2006_v34 = vld [vmem:[#allocation8 + $0x28] sm:$0xff] }
  0x93   : > { %915 = vmatmul.f32.vlgmr.msrb.gmra.mxu1 %v610_v27  ;;  %1167 = vmatpush.bf16.msrb.mxu3 %v2006_v34 }
  0x94   : > { %1264 = vmatpush.bf16.msra.mxu0 %v2014_v39 }
  0x95   : > { %1071 = vmatpush.bf16.msrb.mxu2 %v1997_v30 }
  0x97   : > { %1168 = vmatpush.bf16.msrb.mxu3 %v2005_v43 }
  0x98   : > { %1265 = vmatpush.bf16.msra.mxu0 %v2013_v44 }
  0x99   : > { %1072 = vmatpush.bf16.msrb.mxu2 %v1996_v38 }
  0x9b   : > { %1169 = vmatpush.bf16.msrb.mxu3 %v2004_v59 }
  0x9c   : > { %1266 = vmatpush.bf16.msra.mxu0 %v2012_v37 }
  0x9d   : > { %1073 = vmatpush.bf16.msrb.mxu2 %v1995_v51 }
  0x9f   : > { %1170 = vmatpush.bf16.msrb.mxu3 %v2003_v32 }
  0xa0   : > { %1267 = vmatpush.bf16.msra.mxu0 %v2011_v50 }
  0xa1   : > { %1074 = vmatpush.bf16.msrb.mxu2 %v1994_v14 }
  0xa3   : > { %1171 = vmatpush.bf16.msrb.mxu3 %v2002_v22 }
  0xa4   : > { %1268 = vmatpush.bf16.msra.mxu0 %v2010_v52 }
  0xa5   : > { %1075 = vmatpush.bf16.msrb.mxu2 %v1993_v23 }
  0xa7   : > { %1172 = vmatpush.bf16.msrb.mxu3 %v2001_v16 }
  0xa8   : > { %1269 = vmatpush.bf16.msra.mxu0 %v2009_v24 }
  0xfa   : > { %v717_v28 = vpop.f32.mrf.mxu1 }
 0x102   : > { %v616_v46 = vpop.f32.mrf.mxu0  ;;  %v771_v49 = vpop.f32.mrf.mxu2 }
 0x103   : > { %v718_v48 = vadd.f32 %v717_v28, %v616_v46 }
 0x104   : > { %v810_v7 = vpop.f32.mrf.mxu3 }
 0x105   : > { %v772_v0 = vadd.f32 %v771_v49, %v718_v48 }
 0x107   : > { %v811_v47 = vadd.f32 %v810_v7, %v772_v0 }
 0x10a   : > { %v879_v55 = vpop.f32.mrf.mxu0 }
 0x10b   : > { %v880_v6 = vadd.f32 %v879_v55, %v811_v47 }
 0x110   : > { %v916_v61 = vpop.f32.mrf.mxu1 }
 0x111   : > { %v917_v63 = vadd.f32 %v916_v61, %v880_v6 }
 0x113   : > { %v919_v31 = vmul.f32 0.015625, %v917_v63 }
 0x115   : > { %v920_v1 = vmul.f32 %v919_v31, %v919_v31 }
 0x117   : > { %v922_v53 = vrot.slane %v920_v1, 7 }
 0x119   : > { %v924_v12 = vsub.f32 %v919_v31, %v922_v53 }
 0x11b   : > { %v925_v15 = vmax.f32 %v924_v12, 0.0  ;;  %v2968_v12 = vld [vmem:[%s3085_s7] ss:$0 sm:$0xff] }
 0x11d   : > { %v926_v19 = vadd.f32 1e-06, %v925_v15 }
 0x11f   : > { %2146 = vrsqrt.f32 %v926_v19  ;;  %vm933_vm2 = vweird.f32 %v926_v19 }
 0x125   : > { %v2147_v3 = vpop.eup %2146 }
 0x126   : > { %v928_v20 = vmul.f32 %v2147_v3, %v926_v19  ;;  %vm934_vm1 = vweird.f32 %v2147_v3 }
 0x127   : > { %vm935_vm3 = vmor %vm933_vm2, %vm934_vm1 }
 0x128   : > { %v929_v4 = vmul.f32 %v2147_v3, %v928_v20 }
 0x12a   : > { %v930_v21 = vmul.f32 0.5, %v929_v4 }
 0x12c   : > { %v931_v27 = vsub.f32 1.5, %v930_v21 }
 0x12e   : > { %v932_v29 = vmul.f32 %v2147_v3, %v931_v27 }
 0x130   : > { %v936_v9 = vsel %vm935_vm3, %v2147_v3, %v932_v29 }
 0x131   : > { %v941_v33 = vmul.f32 %v2141_v5, %v936_v9 }
 0x133   : > { %v944_v10 = vrot.slane %v941_v33, 1  ;;  %v948_v40 = vperm.slane %v941_v33, 1  ;;  %v2142_v33 = vld [vmem:[%s3087_s9] ss:$0 sm:$0xff] }
 0x135   : > { %v946_v11 = vmul.f32 %v944_v10, %v919_v31  ;;  %v949_v28 = vmul.f32 %v948_v40, %v2783_v2  ;;  %v950_v36 = vmul.f32 %v948_v40, %v2791_v8  ;;  %v951_v60 = vmul.f32 %v948_v40, %v2801_v26 }
 0x136   : > { %v952_v0 = vmul.f32 %v948_v40, %v2820_v41  ;;  %v953_v55 = vmul.f32 %v948_v40, %v2838_v56  ;;  %v954_v30 = vmul.f32 %v948_v40, %v2854_v13  ;;  %v955_v38 = vmul.f32 %v948_v40, %v2867_v62 }
 0x137   : > { %v947_v17 = vsub.f32 %v942_v35, %v946_v11  ;;  %v956_v59 = vmul.f32 %v948_v40, %v2880_v57 }
 0x139   : > { %v958_v25 = vperm.slane %v947_v17, 0 }
 0x13b   : > { %v960_v42 = vadd.f32 %v958_v25, %v949_v28  ;;  %v961_v45 = vadd.f32 %v958_v25, %v950_v36  ;;  %v962_v7 = vadd.f32 %v958_v25, %v951_v60  ;;  %v963_v18 = vadd.f32 %v958_v25, %v952_v0 }
 0x13c   : > { %v964_v43 = vadd.f32 %v958_v25, %v953_v55  ;;  %v965_v44 = vadd.f32 %v958_v25, %v954_v30  ;;  %v966_v37 = vadd.f32 %v958_v25, %v955_v38  ;;  %v967_v31 = vadd.f32 %v958_v25, %v956_v59 }
 0x13d   : > { %v968_v46 = vpack.c.bf16 %v960_v42, %v960_v42  ;;  %v969_v49 = vpack.c.bf16 %v961_v45, %v961_v45  ;;  %v970_v34 = vpack.c.bf16 %v962_v7, %v962_v7  ;;  %v971_v2 = vpack.c.bf16 %v963_v18, %v963_v18 }
 0x13e   : > { %v972_v26 = vpack.c.bf16 %v964_v43, %v964_v43  ;;  %v973_v6 = vpack.c.bf16 %v965_v44, %v965_v44  ;;  %v974_v56 = vpack.c.bf16 %v966_v37, %v966_v37  ;;  %v975_v1 = vpack.c.bf16 %v967_v31, %v967_v31 }
 0x13f   : > { %v1004_v48 = vunpack.c.l.b16 %v968_v46  ;;  %v1005_v58 = vunpack.c.l.b16 %v969_v49  ;;  %v1006_v39 = vunpack.c.l.b16 %v970_v34  ;;  %v1007_v8 = vunpack.c.l.b16 %v971_v2 }
 0x140   : > { %v1008_v41 = vunpack.c.l.b16 %v972_v26  ;;  %v1009_v61 = vunpack.c.l.b16 %v973_v6  ;;  %v1010_v13 = vunpack.c.l.b16 %v974_v56  ;;  %v1011_v51 = vunpack.c.l.b16 %v975_v1 }
 0x141   : > { %v1012_v54 = vpack.c.b16 %v1005_v58, %v1004_v48  ;;  %v1013_v47 = vpack.c.b16 %v1007_v8, %v1006_v39 }
 0x142   : > { %v1014_v63 = vpack.c.b16 %v1009_v61, %v1008_v41  ;;  %v1015_v32 = vpack.c.b16 %v1011_v51, %v1010_v13 }
 0x143   : > { %1076 = vmatmul.bf16.vlgmr.msrb.gmra.mxu2 %v1012_v54  ;;  %1173 = vmatmul.bf16.vlgmr.msrb.gmra.mxu3 %v1012_v54 }
 0x144   : > { %1270 = vmatmul.bf16.vlgmr.msra.gmra.mxu0 %v1012_v54 }
 0x153   : > { %1081 = vmatmul.bf16.gmra.mxu2 %v1013_v47  ;;  %1178 = vmatmul.bf16.gmra.mxu3 %v1013_v47 }
 0x154   : > { %1275 = vmatmul.bf16.gmra.mxu0 %v1013_v47 }
 0x163   : > { %1086 = vmatmul.bf16.gmra.mxu2 %v1014_v63  ;;  %1183 = vmatmul.bf16.gmra.mxu3 %v1014_v63 }
 0x164   : > { %1280 = vmatmul.bf16.gmra.mxu0 %v1014_v63 }
 0x173   : > { %1091 = vmatmul.bf16.gmra.mxu2 %v1015_v32  ;;  %1188 = vmatmul.bf16.gmra.mxu3 %v1015_v32 }
 0x174   : > { %1285 = vmatmul.bf16.gmra.mxu0 %v1015_v32 }
 0x1c1   : > { %v1271_v50 = vpop.f32.mrf.mxu0 }
 0x1c2   : > { %v1272_v30 = vadd.f32 %v2142_v33, %v1271_v50 }
 0x1c4   : > { %v1307_v31 = vpack.c.bf16 %v1272_v30, %v1272_v30 }
 0x1c6   : > { %v1174_v53 = vpop.f32.mrf.mxu3  ;;  %v1077_v0 = vpop.f32.mrf.mxu2 }
 0x1c7   : > { %v1175_v57 = vadd.f32 %v2968_v12, %v1174_v53 }
 0x1c9   : > { %v1273_v62 = vpop.f32.mrf.mxu0  ;;  %v1299_v22 = vpack.c.bf16 %v1175_v57, %v1175_v57 }
 0x1ca   : > { %v1274_v34 = vadd.f32 %v2142_v33, %v1273_v62  ;;  %v1509_v62 = vunpack.c.l.b16 %v1307_v31 }
 0x1cb   : > { %v2972_v16 = vunpack.c.l.b16 %v1299_v22 }
 0x1cc   : > { %v1308_v61 = vpack.c.bf16 %v1274_v34, %v1274_v34 }
 0x1ce   : > { %v1176_v14 = vpop.f32.mrf.mxu3  ;;  %v1510_v13 = vunpack.c.l.b16 %v1308_v61  ;;  %v1079_v32 = vpop.f32.mrf.mxu2 }
 0x1cf   : > { %v1177_v52 = vadd.f32 %v2968_v12, %v1176_v14 }
 0x1d0   : > { %v1517_v22 = vpack.c.b16 %v1510_v13, %v1509_v62 }
 0x1d1   : > { %v1300_v15 = vpack.c.bf16 %v1177_v52, %v1177_v52  ;;  %v1276_v23 = vpop.f32.mrf.mxu0 }
 0x1d2   : > { %v1277_v49 = vadd.f32 %v2142_v33, %v1276_v23 }
 0x1d3   : > { %v2974_v19 = vunpack.c.l.b16 %v1300_v15 }
 0x1d4   : > { %v1309_v43 = vpack.c.bf16 %v1277_v49, %v1277_v49 }
 0x1d5   : > { %v1355_v24 = vpack.c.b16 %v2974_v19, %v2972_v16 }
 0x1d6   : > { %v1179_v3 = vpop.f32.mrf.mxu3  ;;  %v1511_v56 = vunpack.c.l.b16 %v1309_v43 }
 0x1d7   : > { %v1180_v57 = vadd.f32 %v2968_v12, %v1179_v3 }
 0x1d9   : > { %v1278_v20 = vpop.f32.mrf.mxu0  ;;  %v1301_v23 = vpack.c.bf16 %v1180_v57, %v1180_v57 }
 0x1da   : > { %v1279_v42 = vadd.f32 %v2142_v33, %v1278_v20 }
 0x1dc   : > { %v1310_v2 = vpack.c.bf16 %v1279_v42, %v1279_v42 }
 0x1de   : > { %v1181_v4 = vpop.f32.mrf.mxu3  ;;  %v1512_v63 = vunpack.c.l.b16 %v1310_v2 }
 0x1df   : > { %v1182_v50 = vadd.f32 %v2968_v12, %v1181_v4  ;;  %v2143_v4 = vld [vmem:[%s3083_s5] ss:$0 sm:$0xff] }
 0x1e0   : > { %v1518_v51 = vpack.c.b16 %v1512_v63, %v1511_v56 }
 0x1e1   : > { %v1281_v21 = vpop.f32.mrf.mxu0  ;;  %v1302_v52 = vpack.c.bf16 %v1182_v50, %v1182_v50 }
 0x1e2   : > { %v1282_v17 = vadd.f32 %v2142_v33, %v1281_v21  ;;  %v1082_v21 = vpop.f32.mrf.mxu2 }
 0x1e3   : > { %v1350_v20 = vunpack.c.l.b16 %v1302_v52 }
 0x1e4   : > { %v1311_v48 = vpack.c.bf16 %v1282_v17, %v1282_v17 }
 0x1e6   : > { %v1184_v27 = vpop.f32.mrf.mxu3  ;;  %v1513_v44 = vunpack.c.l.b16 %v1311_v48 }
 0x1e7   : > { %v1185_v26 = vadd.f32 %v2968_v12, %v1184_v27  ;;  %v1349_v27 = vunpack.c.l.b16 %v1301_v23 }
 0x1e9   : > { %v1283_v5 = vpop.f32.mrf.mxu0  ;;  %v1303_v1 = vpack.c.bf16 %v1185_v26, %v1185_v26 }
 0x1ea   : > { %v1284_v11 = vadd.f32 %v2142_v33, %v1283_v5  ;;  %v1356_v5 = vpack.c.b16 %v1350_v20, %v1349_v27  ;;  %v1084_v3 = vpop.f32.mrf.mxu2 }
 0x1eb   : > { %v1351_v14 = vunpack.c.l.b16 %v1303_v1  ;;  %v1085_v17 = vadd.f32 %v2143_v4, %v1084_v3 }
 0x1ec   : > { %v1312_v45 = vpack.c.bf16 %v1284_v11, %v1284_v11 }
 0x1ee   : > { %v1186_v29 = vpop.f32.mrf.mxu3  ;;  %v1514_v39 = vunpack.c.l.b16 %v1312_v45 }
 0x1ef   : > { %v1187_v47 = vadd.f32 %v2968_v12, %v1186_v29  ;;  %v1080_v29 = vadd.f32 %v2143_v4, %v1079_v32 }
 0x1f0   : > { %v1519_v38 = vpack.c.b16 %v1514_v39, %v1513_v44 }
 0x1f1   : > { %v1286_v9 = vpop.f32.mrf.mxu0  ;;  %v1304_v59 = vpack.c.bf16 %v1187_v47, %v1187_v47 }
 0x1f2   : > { %v1287_v10 = vadd.f32 %v2142_v33, %v1286_v9  ;;  %v1078_v9 = vadd.f32 %v2143_v4, %v1077_v0 }
 0x1f3   : > { %v1352_v53 = vunpack.c.l.b16 %v1304_v59 }
 0x1f4   : > { %v1313_v25 = vpack.c.bf16 %v1287_v10, %v1287_v10 }
 0x1f5   : > { %v1357_v15 = vpack.c.b16 %v1352_v53, %v1351_v14 }
 0x1f6   : > { %v1189_v35 = vpop.f32.mrf.mxu3  ;;  %v1515_v58 = vunpack.c.l.b16 %v1313_v25  ;;  %v1083_v25 = vadd.f32 %v2143_v4, %v1082_v21 }
 0x1f7   : > { %v1190_v36 = vadd.f32 %v2968_v12, %v1189_v35 }
 0x1f9   : > { %v1288_v40 = vpop.f32.mrf.mxu0  ;;  %v1305_v7 = vpack.c.bf16 %v1190_v36, %v1190_v36  ;;  %v1293_v36 = vpack.c.bf16 %v1083_v25, %v1083_v25  ;;  %v2023_v25 = vld [vmem:[#allocation11 + $0x30] sm:$0xff] }
 0x1fa   : > { %v1289_v28 = vadd.f32 %v2142_v33, %v1288_v40  ;;  %v1291_v33 = vpack.c.bf16 %v1078_v9, %v1078_v9  ;;  %v1087_v40 = vpop.f32.mrf.mxu2 }
 0x1fb   : > { %v1353_v6 = vunpack.c.l.b16 %v1305_v7 }
 0x1fc   : > { %v1314_v46 = vpack.c.bf16 %v1289_v28, %v1289_v28  ;;  %v1323_v35 = vunpack.c.l.b16 %v1291_v33  ;;  %v1294_v28 = vpack.c.bf16 %v1085_v17, %v1085_v17 }
 0x1fe   : > { %v1516_v54 = vunpack.c.l.b16 %v1314_v46  ;;  %v1191_v60 = vpop.f32.mrf.mxu3  ;;  %v1326_v42 = vunpack.c.l.b16 %v1294_v28  ;;  %v1325_v46 = vunpack.c.l.b16 %v1293_v36 }
 0x1ff   : > { %v1192_v18 = vadd.f32 %v2968_v12, %v1191_v60  ;;  %v1292_v12 = vpack.c.bf16 %v1080_v29, %v1080_v29 }
 0x200   : > { %v1520_v8 = vpack.c.b16 %v1516_v54, %v1515_v58  ;;  %v1332_v49 = vpack.c.b16 %v1326_v42, %v1325_v46  ;;  %v1088_v58 = vadd.f32 %v2143_v4, %v1087_v40  ;;  %v2022_v46 = vld [vmem:[#allocation11 + $0x28] sm:$0xff] }
 0x201   : > { %v1306_v55 = vpack.c.bf16 %v1192_v18, %v1192_v18  ;;  %v1324_v10 = vunpack.c.l.b16 %v1292_v12 }
 0x202   : > { %1541 = vmatpush.bf16.msrb.mxu0 %v1520_v8  ;;  %2026 = vmatpush.bf16.msra.mxu2 %v1520_v8  ;;  %v1089_v45 = vpop.f32.mrf.mxu2  ;;  %v1295_v16 = vpack.c.bf16 %v1088_v58, %v1088_v58 }
 0x203   : > { %v1354_v41 = vunpack.c.l.b16 %v1306_v55  ;;  %v1331_v11 = vpack.c.b16 %v1324_v10, %v1323_v35  ;;  %v1090_v48 = vadd.f32 %v2143_v4, %v1089_v45 }
 0x205   : > { %v1358_v37 = vpack.c.b16 %v1354_v41, %v1353_v6  ;;  %v1296_v60 = vpack.c.bf16 %v1090_v48, %v1090_v48 }
 0x206   : > { %1542 = vmatpush.bf16.msrb.mxu0 %v1519_v38  ;;  %2027 = vmatpush.bf16.msra.mxu2 %v1519_v38 }
 0x207   : > { %1367 = vmatpush.bf16.xpose.msra.mxu1 %v1358_v37  ;;  %v1328_v19 = vunpack.c.l.b16 %v1296_v60 }
 0x20a   : > { %1543 = vmatpush.bf16.msrb.mxu0 %v1518_v51  ;;  %2028 = vmatpush.bf16.msra.mxu2 %v1518_v51  ;;  %v1092_v54 = vpop.f32.mrf.mxu2 }
 0x20b   : > { %v1093_v34 = vadd.f32 %v2143_v4, %v1092_v54 }
 0x20d   : > { %v1297_v39 = vpack.c.bf16 %v1093_v34, %v1093_v34 }
 0x20e   : > { %1544 = vmatpush.bf16.msrb.mxu0 %v1517_v22  ;;  %2029 = vmatpush.bf16.msra.mxu2 %v1517_v22 }
 0x20f   : > { %1368 = vmatpush.bf16.xpose.msra.mxu1 %v1357_v15  ;;  %v1329_v47 = vunpack.c.l.b16 %v1297_v39 }
 0x212   : > { %v1094_v7 = vpop.f32.mrf.mxu2 }
 0x213   : > { %v1095_v18 = vadd.f32 %v2143_v4, %v1094_v7 }
 0x215   : > { %v1298_v2 = vpack.c.bf16 %v1095_v18, %v1095_v18 }
 0x217   : > { %1369 = vmatpush.bf16.xpose.msra.mxu1 %v1356_v5  ;;  %v1330_v8 = vunpack.c.l.b16 %v1298_v2 }
 0x219   : > { %v1334_v55 = vpack.c.b16 %v1330_v8, %v1329_v47 }
 0x21f   : > { %1370 = vmatpush.bf16.xpose.msra.mxu1 %v1355_v24  ;;  %v1327_v24 = vunpack.c.l.b16 %v1295_v16 }
 0x221   : > { %v1333_v0 = vpack.c.b16 %v1328_v19, %v1327_v24 }
 0x226   : > { %1371 = vmatmul.bf16.vlgmr.msra.gmra.mxu1 %v1331_v11  ;;  %v2024_v11 = vld [vmem:[#allocation11 + $0x38] sm:$0xff] }
 0x227   : > { %2030 = vmatpush.bf16.msra.mxu3 %v2024_v11  ;;  %1646 = vmatpush.bf16.msrb.mxu1 %v2024_v11 }
 0x22b   : > { %2031 = vmatpush.bf16.msra.mxu3 %v2023_v25  ;;  %1647 = vmatpush.bf16.msrb.mxu1 %v2023_v25 }
 0x22f   : > { %2032 = vmatpush.bf16.msra.mxu3 %v2022_v46  ;;  %1648 = vmatpush.bf16.msrb.mxu1 %v2022_v46 }
 0x236   : > { %1376 = vmatmul.bf16.gmra.mxu1 %v1332_v49 }
 0x246   : > { %1381 = vmatmul.bf16.gmra.mxu1 %v1333_v0 }
 0x256   : > { %1386 = vmatmul.bf16.gmra.mxu1 %v1334_v55 }
 0x2a3   : > { %v1372_v30 = vpop.f32.mrf.mxu1 }
 0x2a4   : > { %v1393_v63 = vsel %vm1392_vm4, %v1372_v30, -inf }
 0x2ab   : > { %v2993_v43 = vpop.f32.mrf.mxu1 }
 0x2ac   : > { %v1396_v56 = vsel %vm1392_vm4, %v2993_v43, -inf }
 0x2b3   : > { %v1377_v44 = vpop.f32.mrf.mxu1 }
 0x2b4   : > { %v1399_v26 = vsel %vm1392_vm4, %v1377_v44, -inf }
 0x2b5   : > { %1400 = vmax.xlane.f32.xlu0 %v1399_v26 }
 0x2bb   : > { %v1379_v6 = vpop.f32.mrf.mxu1 }
 0x2bc   : > { %v1402_v41 = vsel %vm1392_vm4, %v1379_v6, -inf }
 0x2bd   : > { %1403 = vmax.xlane.f32.xlu0 %v1402_v41 }
 0x2c3   : > { %v1382_v61 = vpop.f32.mrf.mxu1 }
 0x2c4   : > { %v1405_v38 = vsel %vm1392_vm4, %v1382_v61, -inf }
 0x2c5   : > { %1394 = vmax.xlane.f32.xlu0 %v1393_v63  ;;  %1406 = vmax.xlane.f32.xlu1 %v1405_v38 }
 0x2cb   : > { %v1384_v59 = vpop.f32.mrf.mxu1 }
 0x2cc   : > { %v1408_v37 = vsel %vm1392_vm4, %v1384_v59, -inf }
 0x2cd   : > { %1409 = vmax.xlane.f32.xlu1 %v1408_v37 }
 0x2d3   : > { %v1387_v31 = vpop.f32.mrf.mxu1 }
 0x2d4   : > { %v1411_v1 = vsel %vm1392_vm4, %v1387_v31, -inf }
 0x2d5   : > { %1397 = vmax.xlane.f32.xlu1 %v1396_v56  ;;  %1412 = vmax.xlane.f32.xlu2 %v1411_v1 }
 0x2db   : > { %v3003_v13 = vpop.f32.mrf.mxu1 }
 0x2dc   : > { %v1414_v51 = vsel %vm1392_vm4, %v3003_v13, -inf }
 0x2dd   : > { %1415 = vmax.xlane.f32.xlu2 %v1414_v51  ;;  %v2021_v51 = vld [vmem:[#allocation11 + $0x20] sm:$0xff] }
 0x2de   : > { %2033 = vmatpush.bf16.msra.mxu3 %v2021_v51  ;;  %1649 = vmatpush.bf16.msrb.mxu1 %v2021_v51 }
 0x328   : > { %v1401_v32 = vpop.xlane.xlu0 %1400 }
 0x329   : > { %v1419_v50 = vsub.f32 %v1377_v44, %v1401_v32  ;;  %v2020_v32 = vld [vmem:[#allocation11 + $0x18] sm:$0xff] }
 0x32a   : > { %2034 = vmatpush.bf16.msra.mxu3 %v2020_v32  ;;  %1650 = vmatpush.bf16.msrb.mxu1 %v2020_v32 }
 0x32b   : > { %v1429_v53 = vmul.f32 1.442695, %v1419_v50  ;;  %v2019_v50 = vld [vmem:[#allocation11 + $0x10] sm:$0xff] }
 0x32d   : > { %2148 = vpow2.f32 %v1429_v53  ;;  %v2018_v53 = vld [vmem:[#allocation11 + $0x8] sm:$0xff] }
 0x32e   : > { %2035 = vmatpush.bf16.msra.mxu3 %v2019_v50  ;;  %1651 = vmatpush.bf16.msrb.mxu1 %v2019_v50 }
 0x330   : > { %v1404_v62 = vpop.xlane.xlu0 %1403 }
 0x331   : > { %v1420_v57 = vsub.f32 %v1379_v6, %v1404_v62  ;;  %v2017_v62 = vld [vmem:[#allocation11] sm:$0xff] }
 0x332   : > { %2036 = vmatpush.bf16.msra.mxu3 %v2018_v53  ;;  %1652 = vmatpush.bf16.msrb.mxu1 %v2018_v53  ;;  %v1681_v53 = vld [vmem:[%s2645_s6 + $0x30] sm:$0xff] }
 0x333   : > { %v2149_v14 = vpop.eup %2148  ;;  %v1431_v22 = vmul.f32 1.442695, %v1420_v57 }
 0x334   : > { %v1447_v52 = vsel %vm1392_vm4, %v2149_v14, 0.0  ;;  %v1475_v20 = vpack.c.bf16 %v2149_v14, %v2149_v14 }
 0x335   : > { %2150 = vpow2.f32 %v1431_v22  ;;  %1448 = vadd.xlane.f32.xlu2 %v1447_v52 }
 0x336   : > { %v1491_v29 = vunpack.c.l.b16 %v1475_v20  ;;  %2037 = vmatpush.bf16.msra.mxu3 %v2017_v62  ;;  %1653 = vmatpush.bf16.msrb.mxu1 %v2017_v62 }
 0x338   : > { %v1407_v15 = vpop.xlane.xlu1 %1406  ;;  %v1395_v12 = vpop.xlane.xlu0 %1394 }
 0x339   : > { %v1421_v23 = vsub.f32 %v1382_v61, %v1407_v15  ;;  %v1417_v10 = vsub.f32 %v1372_v30, %v1395_v12 }
 0x33b   : > { %v2151_v21 = vpop.eup %2150  ;;  %v1433_v27 = vmul.f32 1.442695, %v1421_v23  ;;  %v1425_v28 = vmul.f32 1.442695, %v1417_v10 }
 0x33c   : > { %v1476_v5 = vpack.c.bf16 %v2151_v21, %v2151_v21  ;;  %v1450_v4 = vsel %vm1392_vm4, %v2151_v21, 0.0 }
 0x33d   : > { %1451 = vadd.xlane.f32.xlu0 %v1450_v4  ;;  %2152 = vpow2.f32 %v1433_v27 }
 0x33e   : > { %v1492_v9 = vunpack.c.l.b16 %v1476_v5 }
 0x340   : > { %v1498_v3 = vpack.c.b16 %v1492_v9, %v1491_v29  ;;  %v1410_v33 = vpop.xlane.xlu1 %1409 }
 0x341   : > { %v1422_v35 = vsub.f32 %v1384_v59, %v1410_v33 }
 0x342   : > { %1952 = vmatmul.msk.bf16.vlgmr.msra.gmra.mxu2 %vm1392_vm4, %v1498_v3 }
 0x343   : > { %v1435_v40 = vmul.f32 1.442695, %v1422_v35  ;;  %v2153_v17 = vpop.eup %2152 }
 0x344   : > { %v1453_v36 = vsel %vm1392_vm4, %v2153_v17, 0.0  ;;  %v1477_v58 = vpack.c.bf16 %v2153_v17, %v2153_v17 }
 0x345   : > { %2154 = vpow2.f32 %v1435_v40  ;;  %1454 = vadd.xlane.f32.xlu1 %v1453_v36 }
 0x346   : > { %2156 = vpow2.f32 %v1425_v28  ;;  %v1493_v0 = vunpack.c.l.b16 %v1477_v58 }
 0x348   : > { %v1398_v42 = vpop.xlane.xlu1 %1397  ;;  %v1413_v45 = vpop.xlane.xlu2 %1412 }
 0x349   : > { %v1418_v49 = vsub.f32 %v2993_v43, %v1398_v42  ;;  %v1423_v48 = vsub.f32 %v1387_v31, %v1413_v45 }
 0x34b   : > { %v2155_v54 = vpop.eup %2154  ;;  %v1427_v60 = vmul.f32 1.442695, %v1418_v49  ;;  %v1437_v16 = vmul.f32 1.442695, %v1423_v48 }
 0x34c   : > { %v1456_v19 = vsel %vm1392_vm4, %v2155_v54, 0.0  ;;  %v1478_v24 = vpack.c.bf16 %v2155_v54, %v2155_v54  ;;  %v2157_v18 = vpop.eup %2156 }
 0x34d   : > { %2158 = vpow2.f32 %v1427_v60  ;;  %1457 = vadd.xlane.f32.xlu2 %v1456_v19  ;;  %v1473_v8 = vpack.c.bf16 %v2157_v18, %v2157_v18  ;;  %v1441_v44 = vsel %vm1392_vm4, %v2157_v18, 0.0 }
 0x34e   : > { %2160 = vpow2.f32 %v1437_v16  ;;  %v1494_v7 = vunpack.c.l.b16 %v1478_v24 }
 0x34f   : > { %v1489_v6 = vunpack.c.l.b16 %v1473_v8 }
 0x350   : > { %v1416_v34 = vpop.xlane.xlu2 %1415  ;;  %v1499_v2 = vpack.c.b16 %v1494_v7, %v1493_v0  ;;  %v2145_v7 = vld [vmem:[%s3128_s29] ss:$0 sm:$0xff]  ;;  %s2380_s29 = scalar_lea.hbm %s3129_s13, 128 }
 0x351   : > { %v1424_v39 = vsub.f32 %v3003_v13, %v1416_v34  ;;  %v1677_v34 = vld [vmem:[%s2645_s6 + $0x10] sm:$0xff]  ;;  %p2382_p8 = scmp.lt.s32.totalorder %s2380_s29, %s2376_s28 }
 0x352   : > { %1953 = vmatmul.msk.bf16.gmra.mxu2 %vm1392_vm4, %v1499_v2 }
 0x353   : > { %v2159_v47 = vpop.eup %2158  ;;  %v1439_v55 = vmul.f32 1.442695, %v1424_v39  ;;  %p2383_p7 = por %p2382_p8, %p2381_p12 }
 0x354   : > { %v2161_v30 = vpop.eup %2160  ;;  %v1474_v43 = vpack.c.bf16 %v2159_v47, %v2159_v47  ;;  %v1444_v31 = vsel %vm1392_vm4, %v2159_v47, 0.0  ;;  %v1678_v47 = vld [vmem:[%s2645_s6 + $0x18] sm:$0xff] }
 0x355   : > { %2162 = vpow2.f32 %v1439_v55  ;;  %v1459_v26 = vsel %vm1392_vm4, %v2161_v30, 0.0  ;;  %1442 = vadd.xlane.f32.xlu2 %v1441_v44  ;;  %v1479_v63 = vpack.c.bf16 %v2161_v30, %v2161_v30  ;;  %v1675_v44 = vld [vmem:[%s2645_s6] sm:$0xff]  ;;  %p2384_p9 = pnand %p2383_p7, %p2379_p5 }
 0x356   : > { %v1490_v41 = vunpack.c.l.b16 %v1474_v43  ;;  %1460 = vadd.xlane.f32.xlu0 %v1459_v26 }
 0x357   : > { %v1495_v56 = vunpack.c.l.b16 %v1479_v63 }
 0x358   : > { %v1497_v61 = vpack.c.b16 %v1490_v41, %v1489_v6 }
 0x35a   : > { %1951 = vmatmul.msk.bf16.vlgmr.msrb.gmra.mxu0 %vm1392_vm4, %v1497_v61  ;;  %v1679_v61 = vld [vmem:[%s2645_s6 + $0x20] sm:$0xff] }
 0x35b   : > { %v2163_v38 = vpop.eup %2162 }
 0x35c   : > { %v1462_v59 = vsel %vm1392_vm4, %v2163_v38, 0.0  ;;  %v1480_v37 = vpack.c.bf16 %v2163_v38, %v2163_v38 }
 0x35d   : > { %1463 = vadd.xlane.f32.xlu1 %v1462_v59 }
 0x35e   : > { %1445 = vadd.xlane.f32.xlu0 %v1444_v31  ;;  %v1496_v1 = vunpack.c.l.b16 %v1480_v37  ;;  %v1676_v37 = vld [vmem:[%s2645_s6 + $0x8] sm:$0xff] }
 0x360   : > { %v1500_v13 = vpack.c.b16 %v1496_v1, %v1495_v56 }
 0x362   : > { %1954 = vmatmul.msk.bf16.gmra.mxu2 %vm1392_vm4, %v1500_v13  ;;  %v1680_v13 = vld [vmem:[%s2645_s6 + $0x28] sm:$0xff] }
 0x3a8   : > { %v1449_v57 = vpop.xlane.xlu2 %1448 }
 0x3a9   : > { %2164 = vrcp.f32 %v1449_v57 }
 0x3af   : > { %v2165_v15 = vpop.eup %2164 }
 0x3b0   : > { %v1452_v14 = vpop.xlane.xlu0 %1451 }
 0x3b1   : > { %2166 = vrcp.f32 %v1452_v14 }
 0x3b7   : > { %v2167_v20 = vpop.eup %2166 }
 0x3b8   : > { %v1455_v29 = vpop.xlane.xlu1 %1454 }
 0x3b9   : > { %2168 = vrcp.f32 %v1455_v29 }
 0x3bf   : > { %v2169_v10 = vpop.eup %2168 }
 0x3c0   : > { %v1458_v52 = vpop.xlane.xlu2 %1457 }
 0x3c1   : > { %2170 = vrcp.f32 %v1458_v52 }
 0x3c5   : > { %v1551_v22 = vpop.f32.mrf.mxu2 }
 0x3c6   : > { %v1568_v27 = vmul.f32 %v2165_v15, %v1551_v22  ;;  %v1682_v22 = vld [vmem:[%s2645_s6 + $0x38] sm:$0xff] }
 0x3c7   : > { %v2171_v35 = vpop.eup %2170 }
 0x3c8   : > { %v1443_v9 = vpop.xlane.xlu2 %1442 }
 0x3c9   : > { %v1461_v23 = vpop.xlane.xlu0 %1460  ;;  %2172 = vrcp.f32 %v1443_v9 }
 0x3cd   : > { %v1553_v21 = vpop.f32.mrf.mxu2 }
 0x3ce   : > { %v1569_v5 = vmul.f32 %v2167_v20, %v1553_v21 }
 0x3cf   : > { %v2173_v40 = vpop.eup %2172 }
 0x3d0   : > { %v1575_v4 = vpack.c.bf16 %v1569_v5, %v1568_v27  ;;  %v1464_v48 = vpop.xlane.xlu1 %1463 }
 0x3d1   : > { %v1446_v3 = vpop.xlane.xlu0 %1445 }
 0x3d2   : > { %1659 = vmatmul.bf16.vlgmr.msra.gmra.mxu3 %v1575_v4  ;;  %2174 = vrcp.f32 %v1446_v3 }
 0x3d3   : > { %2176 = vrcp.f32 %v1461_v23 }
 0x3d4   : > { %2178 = vrcp.f32 %v1464_v48 }
 0x3d5   : > { %v1556_v12 = vpop.f32.mrf.mxu2 }
 0x3d6   : > { %v1570_v17 = vmul.f32 %v2169_v10, %v1556_v12 }
 0x3d7   : > { %v1546_v33 = vpop.f32.mrf.mxu0 }
 0x3d8   : > { %v2175_v28 = vpop.eup %2174  ;;  %v1566_v42 = vmul.f32 %v2173_v40, %v1546_v33 }
 0x3d9   : > { %v2177_v54 = vpop.eup %2176 }
 0x3da   : > { %v2179_v60 = vpop.eup %2178 }
 0x3dd   : > { %v1558_v11 = vpop.f32.mrf.mxu2 }
 0x3de   : > { %v1571_v25 = vmul.f32 %v2171_v35, %v1558_v11 }
 0x3df   : > { %v1548_v36 = vpop.f32.mrf.mxu0 }
 0x3e0   : > { %v1567_v45 = vmul.f32 %v2175_v28, %v1548_v36  ;;  %v1576_v46 = vpack.c.bf16 %v1571_v25, %v1570_v17 }
 0x3e2   : > { %v1574_v49 = vpack.c.bf16 %v1567_v45, %v1566_v42  ;;  %1664 = vmatmul.bf16.gmra.mxu3 %v1576_v46 }
 0x3e4   : > { %1654 = vmatmul.bf16.vlgmr.msrb.gmra.mxu1 %v1574_v49 }
 0x3e5   : > { %v1561_v58 = vpop.f32.mrf.mxu2 }
 0x3e6   : > { %v1572_v19 = vmul.f32 %v2177_v54, %v1561_v58 }
 0x3ed   : > { %v1563_v16 = vpop.f32.mrf.mxu2 }
 0x3ee   : > { %v1573_v24 = vmul.f32 %v2179_v60, %v1563_v16 }
 0x3f0   : > { %v1577_v0 = vpack.c.bf16 %v1573_v24, %v1572_v19 }
 0x3f2   : > { %1669 = vmatmul.bf16.gmra.mxu3 %v1577_v0 }
 0x455   : > { %v1660_v18 = vpop.f32.mrf.mxu3 }
 0x456   : > { %v1661_v2 = vadd.f32 %v2145_v7, %v1660_v18 }
 0x458   : > { %v1685_v39 = vadd.f32 %v1677_v34, %v1661_v2 }
 0x45a   : > { %1693 = vst [vmem:[%s3027_s18 + $0x10] sm:$0xff] %v1685_v39 }
 0x45d   : > { %v1662_v8 = vpop.f32.mrf.mxu3 }
 0x45e   : > { %v1663_v55 = vadd.f32 %v2145_v7, %v1662_v8 }
 0x460   : > { %v1686_v30 = vadd.f32 %v1678_v47, %v1663_v55 }
 0x461   : > { %v1655_v43 = vpop.f32.mrf.mxu1 }
 0x462   : > { %1694 = vst [vmem:[%s3027_s18 + $0x18] sm:$0xff] %v1686_v30  ;;  %v1656_v26 = vadd.f32 %v2145_v7, %v1655_v43 }
 0x464   : > { %v1683_v6 = vadd.f32 %v1675_v44, %v1656_v26 }
 0x465   : > { %v1665_v41 = vpop.f32.mrf.mxu3 }
 0x466   : > { %1691 = vst [vmem:[%s3027_s18] sm:$0xff] %v1683_v6  ;;  %v1666_v63 = vadd.f32 %v2145_v7, %v1665_v41 }
 0x468   : > { %v1687_v38 = vadd.f32 %v1679_v61, %v1666_v63 }
 0x469   : > { %v1657_v59 = vpop.f32.mrf.mxu1 }
 0x46a   : > { %1695 = vst [vmem:[%s3027_s18 + $0x20] sm:$0xff] %v1687_v38  ;;  %v1658_v31 = vadd.f32 %v2145_v7, %v1657_v59 }
 0x46c   : > { %v1684_v56 = vadd.f32 %v1676_v37, %v1658_v31 }
 0x46d   : > { %v1667_v1 = vpop.f32.mrf.mxu3 }
 0x46e   : > { %1692 = vst [vmem:[%s3027_s18 + $0x8] sm:$0xff] %v1684_v56  ;;  %v1668_v51 = vadd.f32 %v2145_v7, %v1667_v1 }
 0x470   : > { %v1688_v32 = vadd.f32 %v1680_v13, %v1668_v51 }
 0x472   : > { %1696 = vst [vmem:[%s3027_s18 + $0x28] sm:$0xff] %v1688_v32 }
 0x475   : > { %v1670_v50 = vpop.f32.mrf.mxu3 }
 0x476   : > { %v1671_v62 = vadd.f32 %v2145_v7, %v1670_v50 }
 0x478   : > { %v1689_v57 = vadd.f32 %v1681_v53, %v1671_v62 }
 0x47a   : > { %1697 = vst [vmem:[%s3027_s18 + $0x30] sm:$0xff] %v1689_v57 }
 0x47d   : > { %v1672_v14 = vpop.f32.mrf.mxu3 }
 0x47e   : > { %v1673_v52 = vadd.f32 %v2145_v7, %v1672_v14 }
 0x480   : > { %v1690_v15 = vadd.f32 %v1682_v22, %v1673_v52 }
 0x482   : > { %1698 = vst [vmem:[%s3027_s18 + $0x38] sm:$0xff] %v1690_v15 }
 0x483   : > { %2387 = shalt.err (!%p2384_p9)
}
 0x484   : > { %s2449_s26 = smov 128   ;;  %s2450_s18 = smov 8  }
 0x485   : > { %2060 = dma.vmem_to_hbm [thread:$0]  (%p2605_p13), %s1713_s25, 1024, %s1715_s12, %s1700_s30, %s2449_s26, %s2449_s26, %s2450_s18  }
 0x486 PF: > { %s1729_s19 = sand.u32 1, %s2426_s21   ;;  %p3130_p10 = scmp.ge.s32.totalorder %s2438_s24, 2 }
 0x487   : > { %s1730_s14 = scalar_lea.sflag [#allocation4], %s1729_s19 }
 0x488   : > { %p2083_p11 = pnand %p3130_p10, %p2610_p4 }
 0x48a   : > { %p2084_p0 = pneg %p2083_p11 }
 0x48c   : > { %2421 = dma.done.wait (%p2084_p0), %s1730_s14, 1024  }
 0x48d   : > { %2423 = vsyncadd (%p2084_p0), %s1730_s14, 4294966272  ;;  %p28_p2 = scmp.ge.s32.totalorder %s2585_s27, 4   ;;  %s3131_s21 = smov %s2430_s22 }
 0x48e   : > { %s3132_s22 = smov %s2434_s23  ;;  %s3133_s23 = smov %s2597_s11 }
 0x48f   : > { %s3134_s24 = smov %s2585_s27  ;;  %30 = sbr.rel (!%p28_p2) target bundleno = 15 (0xf), region = 133 }
 0x494   :  { %1736 = vsyncpa [#allocation3], 1 }
 0x495   :  { %1738 = vsyncpa [#allocation3 + $0x1], 1 }
 0x496   :  { %1739 = vsyncpa [#allocation6], 1 }
 0x497   :  { %1740 = vsyncpa [#allocation9], 1 }
 0x498   :  { %1741 = vsyncpa [#allocation12], 1 }
 0x499   :  { %1742 = vsyncpa [#allocation4], 1 }
 0x49a   :  { %1744 = vsyncpa [#allocation4 + $0x1], 1 }

</bundles_post_ra>
